<compile_context>
chip_gen: v7x
topology: tpu7x:2x2x1
jax: 0.10.0
libtpu: 0.0.40
codegen_flags: <defaults>
</compile_context>

<pallas_src>
import math

import jax
import jax.numpy as jnp
from jax.experimental import pallas as pl
from jax.experimental.pallas import tpu as pltpu

LANE = 128
SUBLANE_BF16 = 16  # bf16 packs (16, 128) elements per vreg


def _mlp_kernel(x_ref, w_in_ref, b_in_ref, w_hid_ref, b_hid_ref,
                w_out_ref, b_out_ref, o_ref):
    """One batch tile through the whole 7-layer MLP.

    x and weights arrive as bf16 (lane-dense); every matmul accumulates in f32
    on the MXU; bias-add and ReLU stay f32.
    """
    # Layer 1: (tm, 128) bf16 @ (128, 256) bf16 -> f32, + bias, ReLU.
    h = jnp.maximum(
        jnp.dot(x_ref[...], w_in_ref[...],
                preferred_element_type=jnp.float32) + b_in_ref[...], 0.0)

    # Layers 2-6: five identical 256x256 hidden layers (stacked operand).
    for i in range(w_hid_ref.shape[0]):
        h = jnp.maximum(
            jnp.dot(h.astype(jnp.bfloat16), w_hid_ref[i],
                    preferred_element_type=jnp.float32) + b_hid_ref[i], 0.0)

    # Layer 7 (lane-padded to 128 output columns), no ReLU.
    o_ref[...] = (jnp.dot(h.astype(jnp.bfloat16), w_out_ref[...],
                          preferred_element_type=jnp.float32)
                  + b_out_ref[...]).astype(o_ref.dtype)


def init_params(key, input_dim=20, output_dim=7, hidden=256):
    """f32 master params mimicking PyTorch Linear init (uniform +-1/sqrt(fan_in)).

    W stored as (in, out) so the kernel computes h @ W + b directly
    (equivalent to PyTorch's x @ W.T + b)."""
    dims = [input_dim] + [hidden] * 6 + [output_dim]
    params = []
    for i in range(7):
        fan_in, fan_out = dims[i], dims[i + 1]
        key, kw, kb = jax.random.split(key, 3)
        bound = 1.0 / math.sqrt(fan_in)
        w = jax.random.uniform(kw, (fan_in, fan_out), jnp.float32, -bound, bound)
        b = jax.random.uniform(kb, (1, fan_out), jnp.float32, -bound, bound)
        params.append((w, b))
    return params


def pack_params(params):
    """f32 master params -> packed kernel operands.

    bf16 weights; input layer zero-padded to a lane-dense 128-wide K; the five
    identical hidden layers stacked into one operand; output layer lane-padded
    to 128 columns."""
    w1, b1 = params[0]
    in_dim, hidden = w1.shape
    in_pad = ((in_dim + LANE - 1) // LANE) * LANE
    w_in = jnp.pad(w1, ((0, in_pad - in_dim), (0, 0))).astype(jnp.bfloat16)

    w_hid = jnp.stack([w for w, _ in params[1:6]]).astype(jnp.bfloat16)  # (5,256,256)
    b_hid = jnp.stack([b for _, b in params[1:6]])                        # (5,1,256) f32

    w7, b7 = params[6]
    out_dim = w7.shape[1]
    n_pad = (-out_dim) % LANE
    w_out = jnp.pad(w7, ((0, 0), (0, n_pad))).astype(jnp.bfloat16)
    b_out = jnp.pad(b7, ((0, 0), (0, n_pad)))

    return {
        "w_in": w_in, "b_in": b1,
        "w_hid": w_hid, "b_hid": b_hid,
        "w_out": w_out, "b_out": b_out,
        "in_dim": in_dim, "out_dim": out_dim,
    }


def _pick_tile(batch):
    """Pick the batch tile.

    Large enough to amortize the ~0.35us per-grid-step overhead and the MXU RHS
    reload, but keeping >=2 grid steps whenever the batch allows it so v7x's
    two TensorCores both get work under dimension_semantics=("parallel",)."""
    if batch >= 2048:
        return 1024
    if batch >= 1024:
        return 512
    if batch >= 2 * SUBLANE_BF16:
        half = ((batch // 2 + SUBLANE_BF16 - 1) // SUBLANE_BF16) * SUBLANE_BF16
        return min(512, half)
    # Small-batch floor: 16 rows keeps the bf16 LHS tile-aligned.
    return max(SUBLANE_BF16,
               ((batch + SUBLANE_BF16 - 1) // SUBLANE_BF16) * SUBLANE_BF16)


def _build_specs(tm, in_pad, hidden, n_hid, n_out_pad, single_buffer_weights):
    def resident(shape, index_map):
        # Constant block index -> DMA'd once and held resident across the grid.
        if single_buffer_weights:
            # Never re-fetched, so one VMEM buffer is enough (saves ~0.7 MiB).
            return pl.BlockSpec(shape, index_map, pipeline_mode=pl.Buffered(1))
        return pl.BlockSpec(shape, index_map)

    in_specs = [
        pl.BlockSpec((tm, in_pad), lambda i: (i, 0)),              # x tile (bf16)
        resident((in_pad, hidden), lambda i: (0, 0)),              # w_in
        resident((1, hidden), lambda i: (0, 0)),                   # b_in
        resident((n_hid, hidden, hidden), lambda i: (0, 0, 0)),    # w_hid (stacked)
        resident((n_hid, 1, hidden), lambda i: (0, 0, 0)),         # b_hid
        resident((hidden, n_out_pad), lambda i: (0, 0)),           # w_out
        resident((1, n_out_pad), lambda i: (0, 0)),                # b_out
    ]
    out_specs = pl.BlockSpec((tm, n_out_pad), lambda i: (i, 0))
    return in_specs, out_specs


def network2_forward(x, packed, tm=None):
    """x: (batch, input_dim) f32. packed: output of pack_params."""
    batch, in_dim = x.shape
    assert in_dim == packed["in_dim"], (in_dim, packed["in_dim"])
    in_pad = packed["w_in"].shape[0]
    hidden = packed["w_in"].shape[1]
    n_hid = packed["w_hid"].shape[0]
    n_out_pad = packed["w_out"].shape[1]
    out_dim = packed["out_dim"]

    if tm is None:
        tm = _pick_tile(batch)
    b_pad = ((batch + tm - 1) // tm) * tm
    grid = (b_pad // tm,)

    # Lane-dense bf16 input: pad features to a 128 multiple, pad batch to tm.
    x_pad = jnp.pad(x, ((0, b_pad - batch), (0, in_pad - in_dim))).astype(jnp.bfloat16)

    flops = 2 * b_pad * (in_pad * hidden + n_hid * hidden * hidden
                         + hidden * n_out_pad)
    bytes_accessed = (x_pad.size * 2
                      + packed["w_in"].size * 2 + packed["b_in"].size * 4
                      + packed["w_hid"].size * 2 + packed["b_hid"].size * 4
                      + packed["w_out"].size * 2 + packed["b_out"].size * 4
                      + b_pad * n_out_pad * 4)

    operands = (x_pad, packed["w_in"], packed["b_in"], packed["w_hid"],
                packed["b_hid"], packed["w_out"], packed["b_out"])

    def run(single_buffer_weights):
        in_specs, out_specs = _build_specs(tm, in_pad, hidden, n_hid,
                                           n_out_pad, single_buffer_weights)
        return pl.pallas_call(
            _mlp_kernel,
            out_shape=jax.ShapeDtypeStruct((b_pad, n_out_pad), jnp.float32),
            grid_spec=pltpu.PrefetchScalarGridSpec(
                num_scalar_prefetch=0,
                grid=grid,
                in_specs=in_specs,
                out_specs=out_specs),
            compiler_params=pltpu.CompilerParams(
                dimension_semantics=("parallel",)),
            cost_estimate=pl.CostEstimate(flops=flops, transcendentals=0,
                                          bytes_accessed=bytes_accessed),
        )(*operands)

    try:
        out_padded = run(single_buffer_weights=True)
    except Exception:
        # pipeline_mode=pl.Buffered(1) not supported by this jax/libtpu combo:
        # fall back to default double-buffered resident weights (same result,
        # just ~0.7 MiB more VMEM).
        out_padded = run(single_buffer_weights=False)

    # NOTE: downstream consumers that can work on the padded (b_pad, 128) slab
    # should skip this slice - it is an extra XLA copy / HBM pass.
    return out_padded[:batch, :out_dim]


def reference_forward_f32(x, params):
    """Exact PyTorch-module semantics (f32 weights)."""
    h = x
    for i, (w, b) in enumerate(params):
        h = h @ w + b
        if i < len(params) - 1:
            h = jnp.maximum(h, 0.0)
    return h


def reference_forward_bf16(x, params):
    """Reference with the kernel's precision (bf16 matmul inputs, f32 accum)."""
    h = x
    for i, (w, b) in enumerate(params):
        y = jnp.dot(h.astype(jnp.bfloat16), w.astype(jnp.bfloat16),
                    preferred_element_type=jnp.float32) + b
        h = jnp.maximum(y, 0.0) if i < len(params) - 1 else y
    return h


if __name__ == "__main__":
    key = jax.random.PRNGKey(0)
    key, kx, kx2 = jax.random.split(key, 3)

    input_dim, output_dim = 20, 7
    params = init_params(key, input_dim=input_dim, output_dim=output_dim)
    packed = pack_params(params)

    # --- Small latency-path check (single grid step, tm floor of 16). ---
    batch = 8
    x = jax.random.normal(kx, (batch, input_dim), jnp.float32)
    out = jax.block_until_ready(network2_forward(x, packed))

    ref_match = reference_forward_bf16(x, params)   # matching precision path
    ref_f32 = reference_forward_f32(x, params)      # original module semantics

    assert out.shape == (batch, output_dim), out.shape
    assert jnp.allclose(out, ref_match, atol=2e-2, rtol=2e-2), (
        float(jnp.max(jnp.abs(out - ref_match))))
    assert jnp.allclose(out, ref_f32, atol=1e-1, rtol=1e-1), (
        float(jnp.max(jnp.abs(out - ref_f32))))

    # --- Multi-tile path check (>=2 grid steps, as used by v7x dual-TC). ---
    batch2 = 96
    x2 = jax.random.normal(kx2, (batch2, input_dim), jnp.float32)
    out2 = jax.block_until_ready(network2_forward(x2, packed))
    ref2 = reference_forward_bf16(x2, params)
    assert out2.shape == (batch2, output_dim), out2.shape
    assert jnp.allclose(out2, ref2, atol=2e-2, rtol=2e-2), (
        float(jnp.max(jnp.abs(out2 - ref2))))

    print("KERNEL_OK")
</pallas_src>

<mosaic_0001>
module attributes {stable_mosaic.version = 11 : i64} {
  func.func @_mlp_kernel(%arg0: i32, %arg1: memref<16x128xbf16, #tpu.memory_space<vmem>>, %arg2: memref<128x256xbf16, #tpu.memory_space<vmem>>, %arg3: memref<1x256xf32, #tpu.memory_space<vmem>>, %arg4: memref<5x256x256xbf16, #tpu.memory_space<vmem>>, %arg5: memref<5x1x256xf32, #tpu.memory_space<vmem>>, %arg6: memref<256x128xbf16, #tpu.memory_space<vmem>>, %arg7: memref<1x128xf32, #tpu.memory_space<vmem>>, %arg8: memref<16x128xf32, #tpu.memory_space<vmem>>) attributes {dimension_semantics = [#tpu.dimension_semantics<parallel>], iteration_bounds = array<i64: 1>, scalar_prefetch = 0 : i64, scratch_operands = 0 : i64, tpu.core_type = #tpu.core_type<tc>, window_params = [{transform_indices = @transform_0, window_bounds = array<i64: 16, 128>}, {pipeline_mode = #tpu.pipeline_mode<synchronous>, transform_indices = @transform_1, window_bounds = array<i64: 128, 256>}, {pipeline_mode = #tpu.pipeline_mode<synchronous>, transform_indices = @transform_2, window_bounds = array<i64: 1, 256>}, {pipeline_mode = #tpu.pipeline_mode<synchronous>, transform_indices = @transform_3, window_bounds = array<i64: 5, 256, 256>}, {pipeline_mode = #tpu.pipeline_mode<synchronous>, transform_indices = @transform_4, window_bounds = array<i64: 5, 1, 256>}, {pipeline_mode = #tpu.pipeline_mode<synchronous>, transform_indices = @transform_5, window_bounds = array<i64: 256, 128>}, {pipeline_mode = #tpu.pipeline_mode<synchronous>, transform_indices = @transform_6, window_bounds = array<i64: 1, 128>}, {transform_indices = @transform_7, window_bounds = array<i64: 16, 128>}]} {
    %c0 = arith.constant 0 : index
    %c0_0 = arith.constant 0 : index
    %0 = vector.load %arg1[%c0, %c0_0] : memref<16x128xbf16, #tpu.memory_space<vmem>>, vector<16x128xbf16>
    %c0_1 = arith.constant 0 : index
    %c0_2 = arith.constant 0 : index
    %1 = vector.load %arg2[%c0_1, %c0_2] : memref<128x256xbf16, #tpu.memory_space<vmem>>, vector<128x256xbf16>
    %cst = arith.constant dense<0.000000e+00> : vector<16x256xf32>
    %2 = tpu.matmul %0, %1, %cst {dimension_numbers = #tpu.dot_dimension_numbers<[1], [0], [0], [1], [0, 0, 1, 1], [], []>} : vector<16x128xbf16>, vector<128x256xbf16>, vector<16x256xf32> -> vector<16x256xf32>
    %c0_3 = arith.constant 0 : index
    %c0_4 = arith.constant 0 : index
    %3 = vector.load %arg3[%c0_3, %c0_4] : memref<1x256xf32, #tpu.memory_space<vmem>>, vector<1x256xf32>
    %4 = vector.broadcast %3 : vector<1x256xf32> to vector<16x256xf32>
    %5 = arith.addf %2, %4 : vector<16x256xf32>
    %cst_5 = arith.constant 0.000000e+00 : f32
    %6 = vector.broadcast %cst_5 : f32 to vector<16x256xf32>
    %7 = arith.maximumf %5, %6 : vector<16x256xf32>
    %8 = arith.truncf %7 : vector<16x256xf32> to vector<16x256xbf16>
    %c0_6 = arith.constant 0 : index
    %c0_7 = arith.constant 0 : index
    %c0_8 = arith.constant 0 : index
    %9 = vector.load %arg4[%c0_6, %c0_7, %c0_8] : memref<5x256x256xbf16, #tpu.memory_space<vmem>>, vector<1x256x256xbf16>
    %10 = vector.shape_cast %9 : vector<1x256x256xbf16> to vector<256x256xbf16>
    %cst_9 = arith.constant dense<0.000000e+00> : vector<16x256xf32>
    %11 = tpu.matmul %8, %10, %cst_9 {dimension_numbers = #tpu.dot_dimension_numbers<[1], [0], [0], [1], [0, 0, 1, 1], [], []>} : vector<16x256xbf16>, vector<256x256xbf16>, vector<16x256xf32> -> vector<16x256xf32>
    %c0_10 = arith.constant 0 : index
    %c0_11 = arith.constant 0 : index
    %c0_12 = arith.constant 0 : index
    %12 = vector.load %arg5[%c0_10, %c0_11, %c0_12] : memref<5x1x256xf32, #tpu.memory_space<vmem>>, vector<1x1x256xf32>
    %13 = vector.shape_cast %12 : vector<1x1x256xf32> to vector<1x256xf32>
    %14 = vector.broadcast %13 : vector<1x256xf32> to vector<16x256xf32>
    %15 = arith.addf %11, %14 : vector<16x256xf32>
    %cst_13 = arith.constant 0.000000e+00 : f32
    %16 = vector.broadcast %cst_13 : f32 to vector<16x256xf32>
    %17 = arith.maximumf %15, %16 : vector<16x256xf32>
    %18 = arith.truncf %17 : vector<16x256xf32> to vector<16x256xbf16>
    %c1 = arith.constant 1 : index
    %c0_14 = arith.constant 0 : index
    %c0_15 = arith.constant 0 : index
    %19 = vector.load %arg4[%c1, %c0_14, %c0_15] : memref<5x256x256xbf16, #tpu.memory_space<vmem>>, vector<1x256x256xbf16>
    %20 = vector.shape_cast %19 : vector<1x256x256xbf16> to vector<256x256xbf16>
    %cst_16 = arith.constant dense<0.000000e+00> : vector<16x256xf32>
    %21 = tpu.matmul %18, %20, %cst_16 {dimension_numbers = #tpu.dot_dimension_numbers<[1], [0], [0], [1], [0, 0, 1, 1], [], []>} : vector<16x256xbf16>, vector<256x256xbf16>, vector<16x256xf32> -> vector<16x256xf32>
    %c1_17 = arith.constant 1 : index
    %c0_18 = arith.constant 0 : index
    %c0_19 = arith.constant 0 : index
    %22 = vector.load %arg5[%c1_17, %c0_18, %c0_19] : memref<5x1x256xf32, #tpu.memory_space<vmem>>, vector<1x1x256xf32>
    %23 = vector.shape_cast %22 : vector<1x1x256xf32> to vector<1x256xf32>
    %24 = vector.broadcast %23 : vector<1x256xf32> to vector<16x256xf32>
    %25 = arith.addf %21, %24 : vector<16x256xf32>
    %cst_20 = arith.constant 0.000000e+00 : f32
    %26 = vector.broadcast %cst_20 : f32 to vector<16x256xf32>
    %27 = arith.maximumf %25, %26 : vector<16x256xf32>
    %28 = arith.truncf %27 : vector<16x256xf32> to vector<16x256xbf16>
    %c2 = arith.constant 2 : index
    %c0_21 = arith.constant 0 : index
    %c0_22 = arith.constant 0 : index
    %29 = vector.load %arg4[%c2, %c0_21, %c0_22] : memref<5x256x256xbf16, #tpu.memory_space<vmem>>, vector<1x256x256xbf16>
    %30 = vector.shape_cast %29 : vector<1x256x256xbf16> to vector<256x256xbf16>
    %cst_23 = arith.constant dense<0.000000e+00> : vector<16x256xf32>
    %31 = tpu.matmul %28, %30, %cst_23 {dimension_numbers = #tpu.dot_dimension_numbers<[1], [0], [0], [1], [0, 0, 1, 1], [], []>} : vector<16x256xbf16>, vector<256x256xbf16>, vector<16x256xf32> -> vector<16x256xf32>
    %c2_24 = arith.constant 2 : index
    %c0_25 = arith.constant 0 : index
    %c0_26 = arith.constant 0 : index
    %32 = vector.load %arg5[%c2_24, %c0_25, %c0_26] : memref<5x1x256xf32, #tpu.memory_space<vmem>>, vector<1x1x256xf32>
    %33 = vector.shape_cast %32 : vector<1x1x256xf32> to vector<1x256xf32>
    %34 = vector.broadcast %33 : vector<1x256xf32> to vector<16x256xf32>
    %35 = arith.addf %31, %34 : vector<16x256xf32>
    %cst_27 = arith.constant 0.000000e+00 : f32
    %36 = vector.broadcast %cst_27 : f32 to vector<16x256xf32>
    %37 = arith.maximumf %35, %36 : vector<16x256xf32>
    %38 = arith.truncf %37 : vector<16x256xf32> to vector<16x256xbf16>
    %c3 = arith.constant 3 : index
    %c0_28 = arith.constant 0 : index
    %c0_29 = arith.constant 0 : index
    %39 = vector.load %arg4[%c3, %c0_28, %c0_29] : memref<5x256x256xbf16, #tpu.memory_space<vmem>>, vector<1x256x256xbf16>
    %40 = vector.shape_cast %39 : vector<1x256x256xbf16> to vector<256x256xbf16>
    %cst_30 = arith.constant dense<0.000000e+00> : vector<16x256xf32>
    %41 = tpu.matmul %38, %40, %cst_30 {dimension_numbers = #tpu.dot_dimension_numbers<[1], [0], [0], [1], [0, 0, 1, 1], [], []>} : vector<16x256xbf16>, vector<256x256xbf16>, vector<16x256xf32> -> vector<16x256xf32>
    %c3_31 = arith.constant 3 : index
    %c0_32 = arith.constant 0 : index
    %c0_33 = arith.constant 0 : index
    %42 = vector.load %arg5[%c3_31, %c0_32, %c0_33] : memref<5x1x256xf32, #tpu.memory_space<vmem>>, vector<1x1x256xf32>
    %43 = vector.shape_cast %42 : vector<1x1x256xf32> to vector<1x256xf32>
    %44 = vector.broadcast %43 : vector<1x256xf32> to vector<16x256xf32>
    %45 = arith.addf %41, %44 : vector<16x256xf32>
    %cst_34 = arith.constant 0.000000e+00 : f32
    %46 = vector.broadcast %cst_34 : f32 to vector<16x256xf32>
    %47 = arith.maximumf %45, %46 : vector<16x256xf32>
    %48 = arith.truncf %47 : vector<16x256xf32> to vector<16x256xbf16>
    %c4 = arith.constant 4 : index
    %c0_35 = arith.constant 0 : index
    %c0_36 = arith.constant 0 : index
    %49 = vector.load %arg4[%c4, %c0_35, %c0_36] : memref<5x256x256xbf16, #tpu.memory_space<vmem>>, vector<1x256x256xbf16>
    %50 = vector.shape_cast %49 : vector<1x256x256xbf16> to vector<256x256xbf16>
    %cst_37 = arith.constant dense<0.000000e+00> : vector<16x256xf32>
    %51 = tpu.matmul %48, %50, %cst_37 {dimension_numbers = #tpu.dot_dimension_numbers<[1], [0], [0], [1], [0, 0, 1, 1], [], []>} : vector<16x256xbf16>, vector<256x256xbf16>, vector<16x256xf32> -> vector<16x256xf32>
    %c4_38 = arith.constant 4 : index
    %c0_39 = arith.constant 0 : index
    %c0_40 = arith.constant 0 : index
    %52 = vector.load %arg5[%c4_38, %c0_39, %c0_40] : memref<5x1x256xf32, #tpu.memory_space<vmem>>, vector<1x1x256xf32>
    %53 = vector.shape_cast %52 : vector<1x1x256xf32> to vector<1x256xf32>
    %54 = vector.broadcast %53 : vector<1x256xf32> to vector<16x256xf32>
    %55 = arith.addf %51, %54 : vector<16x256xf32>
    %cst_41 = arith.constant 0.000000e+00 : f32
    %56 = vector.broadcast %cst_41 : f32 to vector<16x256xf32>
    %57 = arith.maximumf %55, %56 : vector<16x256xf32>
    %58 = arith.truncf %57 : vector<16x256xf32> to vector<16x256xbf16>
    %c0_42 = arith.constant 0 : index
    %c0_43 = arith.constant 0 : index
    %59 = vector.load %arg6[%c0_42, %c0_43] : memref<256x128xbf16, #tpu.memory_space<vmem>>, vector<256x128xbf16>
    %cst_44 = arith.constant dense<0.000000e+00> : vector<16x128xf32>
    %60 = tpu.matmul %58, %59, %cst_44 {dimension_numbers = #tpu.dot_dimension_numbers<[1], [0], [0], [1], [0, 0, 1, 1], [], []>} : vector<16x256xbf16>, vector<256x128xbf16>, vector<16x128xf32> -> vector<16x128xf32>
    %c0_45 = arith.constant 0 : index
    %c0_46 = arith.constant 0 : index
    %61 = vector.load %arg7[%c0_45, %c0_46] : memref<1x128xf32, #tpu.memory_space<vmem>>, vector<1x128xf32>
    %62 = vector.broadcast %61 : vector<1x128xf32> to vector<16x128xf32>
    %63 = arith.addf %60, %62 : vector<16x128xf32>
    %c0_47 = arith.constant 0 : index
    %c0_48 = arith.constant 0 : index
    %64 = vector.load %arg8[%c0_47, %c0_48] : memref<16x128xf32, #tpu.memory_space<vmem>>, vector<16x128xf32>
    tpu.vector_store %arg8[%c0_47, %c0_48], %63 {strides = array<i32>} : memref<16x128xf32, #tpu.memory_space<vmem>>, vector<16x128xf32>,
    return
  }
  func.func @transform_0(%arg0: i32) -> (i32, i32) {
    %c0_i32 = arith.constant 0 : i32
    %c0_i32_0 = arith.constant 0 : i32
    return %arg0, %c0_i32 : i32, i32
  }
  func.func @transform_1(%arg0: i32) -> (i32, i32) {
    %c0_i32 = arith.constant 0 : i32
    %c0_i32_0 = arith.constant 0 : i32
    %c0_i32_1 = arith.constant 0 : i32
    return %c0_i32, %c0_i32_0 : i32, i32
  }
  func.func @transform_2(%arg0: i32) -> (i32, i32) {
    %c0_i32 = arith.constant 0 : i32
    %c0_i32_0 = arith.constant 0 : i32
    %c0_i32_1 = arith.constant 0 : i32
    return %c0_i32, %c0_i32_0 : i32, i32
  }
  func.func @transform_3(%arg0: i32) -> (i32, i32, i32) {
    %c0_i32 = arith.constant 0 : i32
    %c0_i32_0 = arith.constant 0 : i32
    %c0_i32_1 = arith.constant 0 : i32
    %c0_i32_2 = arith.constant 0 : i32
    return %c0_i32, %c0_i32_0, %c0_i32_1 : i32, i32, i32
  }
  func.func @transform_4(%arg0: i32) -> (i32, i32, i32) {
    %c0_i32 = arith.constant 0 : i32
    %c0_i32_0 = arith.constant 0 : i32
    %c0_i32_1 = arith.constant 0 : i32
    %c0_i32_2 = arith.constant 0 : i32
    return %c0_i32, %c0_i32_0, %c0_i32_1 : i32, i32, i32
  }
  func.func @transform_5(%arg0: i32) -> (i32, i32) {
    %c0_i32 = arith.constant 0 : i32
    %c0_i32_0 = arith.constant 0 : i32
    %c0_i32_1 = arith.constant 0 : i32
    return %c0_i32, %c0_i32_0 : i32, i32
  }
  func.func @transform_6(%arg0: i32) -> (i32, i32) {
    %c0_i32 = arith.constant 0 : i32
    %c0_i32_0 = arith.constant 0 : i32
    %c0_i32_1 = arith.constant 0 : i32
    return %c0_i32, %c0_i32_0 : i32, i32
  }
  func.func @transform_7(%arg0: i32) -> (i32, i32) {
    %c0_i32 = arith.constant 0 : i32
    %c0_i32_0 = arith.constant 0 : i32
    return %arg0, %c0_i32 : i32, i32
  }
}

module attributes {stable_mosaic.version = 11 : i64} {
  func.func @_mlp_kernel(%arg0: i32, %arg1: memref<16x128xbf16, #tpu.memory_space<vmem>>, %arg2: memref<128x256xbf16, #tpu.memory_space<vmem>>, %arg3: memref<1x256xf32, #tpu.memory_space<vmem>>, %arg4: memref<5x256x256xbf16, #tpu.memory_space<vmem>>, %arg5: memref<5x1x256xf32, #tpu.memory_space<vmem>>, %arg6: memref<256x128xbf16, #tpu.memory_space<vmem>>, %arg7: memref<1x128xf32, #tpu.memory_space<vmem>>, %arg8: memref<16x128xf32, #tpu.memory_space<vmem>>) attributes {dimension_semantics = [#tpu.dimension_semantics<parallel>], iteration_bounds = array<i64: 1>, scalar_prefetch = 0 : i64, scratch_operands = 0 : i64, tpu.core_type = #tpu.core_type<tc>, window_params = [{transform_indices = @transform_0, window_bounds = array<i64: 16, 128>}, {pipeline_mode = #tpu.pipeline_mode<synchronous>, transform_indices = @transform_1, window_bounds = array<i64: 128, 256>}, {pipeline_mode = #tpu.pipeline_mode<synchronous>, transform_indices = @transform_2, window_bounds = array<i64: 1, 256>}, {pipeline_mode = #tpu.pipeline_mode<synchronous>, transform_indices = @transform_3, window_bounds = array<i64: 5, 256, 256>}, {pipeline_mode = #tpu.pipeline_mode<synchronous>, transform_indices = @transform_4, window_bounds = array<i64: 5, 1, 256>}, {pipeline_mode = #tpu.pipeline_mode<synchronous>, transform_indices = @transform_5, window_bounds = array<i64: 256, 128>}, {pipeline_mode = #tpu.pipeline_mode<synchronous>, transform_indices = @transform_6, window_bounds = array<i64: 1, 128>}, {transform_indices = @transform_7, window_bounds = array<i64: 16, 128>}]} {
    %c0 = arith.constant 0 : index
    %c0_0 = arith.constant 0 : index
    %0 = vector.load %arg1[%c0, %c0_0] : memref<16x128xbf16, #tpu.memory_space<vmem>>, vector<16x128xbf16>
    %c0_1 = arith.constant 0 : index
    %c0_2 = arith.constant 0 : index
    %1 = vector.load %arg2[%c0_1, %c0_2] : memref<128x256xbf16, #tpu.memory_space<vmem>>, vector<128x256xbf16>
    %cst = arith.constant dense<0.000000e+00> : vector<16x256xf32>
    %2 = tpu.matmul %0, %1, %cst {dimension_numbers = #tpu.dot_dimension_numbers<[1], [0], [0], [1], [0, 0, 1, 1], [], []>} : vector<16x128xbf16>, vector<128x256xbf16>, vector<16x256xf32> -> vector<16x256xf32>
    %c0_3 = arith.constant 0 : index
    %c0_4 = arith.constant 0 : index
    %3 = vector.load %arg3[%c0_3, %c0_4] : memref<1x256xf32, #tpu.memory_space<vmem>>, vector<1x256xf32>
    %4 = vector.broadcast %3 : vector<1x256xf32> to vector<16x256xf32>
    %5 = arith.addf %2, %4 : vector<16x256xf32>
    %cst_5 = arith.constant 0.000000e+00 : f32
    %6 = vector.broadcast %cst_5 : f32 to vector<16x256xf32>
    %7 = arith.maximumf %5, %6 : vector<16x256xf32>
    %8 = arith.truncf %7 : vector<16x256xf32> to vector<16x256xbf16>
    %c0_6 = arith.constant 0 : index
    %c0_7 = arith.constant 0 : index
    %c0_8 = arith.constant 0 : index
    %9 = vector.load %arg4[%c0_6, %c0_7, %c0_8] : memref<5x256x256xbf16, #tpu.memory_space<vmem>>, vector<1x256x256xbf16>
    %10 = vector.shape_cast %9 : vector<1x256x256xbf16> to vector<256x256xbf16>
    %cst_9 = arith.constant dense<0.000000e+00> : vector<16x256xf32>
    %11 = tpu.matmul %8, %10, %cst_9 {dimension_numbers = #tpu.dot_dimension_numbers<[1], [0], [0], [1], [0, 0, 1, 1], [], []>} : vector<16x256xbf16>, vector<256x256xbf16>, vector<16x256xf32> -> vector<16x256xf32>
    %c0_10 = arith.constant 0 : index
    %c0_11 = arith.constant 0 : index
    %c0_12 = arith.constant 0 : index
    %12 = vector.load %arg5[%c0_10, %c0_11, %c0_12] : memref<5x1x256xf32, #tpu.memory_space<vmem>>, vector<1x1x256xf32>
    %13 = vector.shape_cast %12 : vector<1x1x256xf32> to vector<1x256xf32>
    %14 = vector.broadcast %13 : vector<1x256xf32> to vector<16x256xf32>
    %15 = arith.addf %11, %14 : vector<16x256xf32>
    %cst_13 = arith.constant 0.000000e+00 : f32
    %16 = vector.broadcast %cst_13 : f32 to vector<16x256xf32>
    %17 = arith.maximumf %15, %16 : vector<16x256xf32>
    %18 = arith.truncf %17 : vector<16x256xf32> to vector<16x256xbf16>
    %c1 = arith.constant 1 : index
    %c0_14 = arith.constant 0 : index
    %c0_15 = arith.constant 0 : index
    %19 = vector.load %arg4[%c1, %c0_14, %c0_15] : memref<5x256x256xbf16, #tpu.memory_space<vmem>>, vector<1x256x256xbf16>
    %20 = vector.shape_cast %19 : vector<1x256x256xbf16> to vector<256x256xbf16>
    %cst_16 = arith.constant dense<0.000000e+00> : vector<16x256xf32>
    %21 = tpu.matmul %18, %20, %cst_16 {dimension_numbers = #tpu.dot_dimension_numbers<[1], [0], [0], [1], [0, 0, 1, 1], [], []>} : vector<16x256xbf16>, vector<256x256xbf16>, vector<16x256xf32> -> vector<16x256xf32>
    %c1_17 = arith.constant 1 : index
    %c0_18 = arith.constant 0 : index
    %c0_19 = arith.constant 0 : index
    %22 = vector.load %arg5[%c1_17, %c0_18, %c0_19] : memref<5x1x256xf32, #tpu.memory_space<vmem>>, vector<1x1x256xf32>
    %23 = vector.shape_cast %22 : vector<1x1x256xf32> to vector<1x256xf32>
    %24 = vector.broadcast %23 : vector<1x256xf32> to vector<16x256xf32>
    %25 = arith.addf %21, %24 : vector<16x256xf32>
    %cst_20 = arith.constant 0.000000e+00 : f32
    %26 = vector.broadcast %cst_20 : f32 to vector<16x256xf32>
    %27 = arith.maximumf %25, %26 : vector<16x256xf32>
    %28 = arith.truncf %27 : vector<16x256xf32> to vector<16x256xbf16>
    %c2 = arith.constant 2 : index
    %c0_21 = arith.constant 0 : index
    %c0_22 = arith.constant 0 : index
    %29 = vector.load %arg4[%c2, %c0_21, %c0_22] : memref<5x256x256xbf16, #tpu.memory_space<vmem>>, vector<1x256x256xbf16>
    %30 = vector.shape_cast %29 : vector<1x256x256xbf16> to vector<256x256xbf16>
    %cst_23 = arith.constant dense<0.000000e+00> : vector<16x256xf32>
    %31 = tpu.matmul %28, %30, %cst_23 {dimension_numbers = #tpu.dot_dimension_numbers<[1], [0], [0], [1], [0, 0, 1, 1], [], []>} : vector<16x256xbf16>, vector<256x256xbf16>, vector<16x256xf32> -> vector<16x256xf32>
    %c2_24 = arith.constant 2 : index
    %c0_25 = arith.constant 0 : index
    %c0_26 = arith.constant 0 : index
    %32 = vector.load %arg5[%c2_24, %c0_25, %c0_26] : memref<5x1x256xf32, #tpu.memory_space<vmem>>, vector<1x1x256xf32>
    %33 = vector.shape_cast %32 : vector<1x1x256xf32> to vector<1x256xf32>
    %34 = vector.broadcast %33 : vector<1x256xf32> to vector<16x256xf32>
    %35 = arith.addf %31, %34 : vector<16x256xf32>
    %cst_27 = arith.constant 0.000000e+00 : f32
    %36 = vector.broadcast %cst_27 : f32 to vector<16x256xf32>
    %37 = arith.maximumf %35, %36 : vector<16x256xf32>
    %38 = arith.truncf %37 : vector<16x256xf32> to vector<16x256xbf16>
    %c3 = arith.constant 3 : index
    %c0_28 = arith.constant 0 : index
    %c0_29 = arith.constant 0 : index
    %39 = vector.load %arg4[%c3, %c0_28, %c0_29] : memref<5x256x256xbf16, #tpu.memory_space<vmem>>, vector<1x256x256xbf16>
    %40 = vector.shape_cast %39 : vector<1x256x256xbf16> to vector<256x256xbf16>
    %cst_30 = arith.constant dense<0.000000e+00> : vector<16x256xf32>
    %41 = tpu.matmul %38, %40, %cst_30 {dimension_numbers = #tpu.dot_dimension_numbers<[1], [0], [0], [1], [0, 0, 1, 1], [], []>} : vector<16x256xbf16>, vector<256x256xbf16>, vector<16x256xf32> -> vector<16x256xf32>
    %c3_31 = arith.constant 3 : index
    %c0_32 = arith.constant 0 : index
    %c0_33 = arith.constant 0 : index
    %42 = vector.load %arg5[%c3_31, %c0_32, %c0_33] : memref<5x1x256xf32, #tpu.memory_space<vmem>>, vector<1x1x256xf32>
    %43 = vector.shape_cast %42 : vector<1x1x256xf32> to vector<1x256xf32>
    %44 = vector.broadcast %43 : vector<1x256xf32> to vector<16x256xf32>
    %45 = arith.addf %41, %44 : vector<16x256xf32>
    %cst_34 = arith.constant 0.000000e+00 : f32
    %46 = vector.broadcast %cst_34 : f32 to vector<16x256xf32>
    %47 = arith.maximumf %45, %46 : vector<16x256xf32>
    %48 = arith.truncf %47 : vector<16x256xf32> to vector<16x256xbf16>
    %c4 = arith.constant 4 : index
    %c0_35 = arith.constant 0 : index
    %c0_36 = arith.constant 0 : index
    %49 = vector.load %arg4[%c4, %c0_35, %c0_36] : memref<5x256x256xbf16, #tpu.memory_space<vmem>>, vector<1x256x256xbf16>
    %50 = vector.shape_cast %49 : vector<1x256x256xbf16> to vector<256x256xbf16>
    %cst_37 = arith.constant dense<0.000000e+00> : vector<16x256xf32>
    %51 = tpu.matmul %48, %50, %cst_37 {dimension_numbers = #tpu.dot_dimension_numbers<[1], [0], [0], [1], [0, 0, 1, 1], [], []>} : vector<16x256xbf16>, vector<256x256xbf16>, vector<16x256xf32> -> vector<16x256xf32>
    %c4_38 = arith.constant 4 : index
    %c0_39 = arith.constant 0 : index
    %c0_40 = arith.constant 0 : index
    %52 = vector.load %arg5[%c4_38, %c0_39, %c0_40] : memref<5x1x256xf32, #tpu.memory_space<vmem>>, vector<1x1x256xf32>
    %53 = vector.shape_cast %52 : vector<1x1x256xf32> to vector<1x256xf32>
    %54 = vector.broadcast %53 : vector<1x256xf32> to vector<16x256xf32>
    %55 = arith.addf %51, %54 : vector<16x256xf32>
    %cst_41 = arith.constant 0.000000e+00 : f32
    %56 = vector.broadcast %cst_41 : f32 to vector<16x256xf32>
    %57 = arith.maximumf %55, %56 : vector<16x256xf32>
    %58 = arith.truncf %57 : vector<16x256xf32> to vector<16x256xbf16>
    %c0_42 = arith.constant 0 : index
    %c0_43 = arith.constant 0 : index
    %59 = vector.load %arg6[%c0_42, %c0_43] : memref<256x128xbf16, #tpu.memory_space<vmem>>, vector<256x128xbf16>
    %cst_44 = arith.constant dense<0.000000e+00> : vector<16x128xf32>
    %60 = tpu.matmul %58, %59, %cst_44 {dimension_numbers = #tpu.dot_dimension_numbers<[1], [0], [0], [1], [0, 0, 1, 1], [], []>} : vector<16x256xbf16>, vector<256x128xbf16>, vector<16x128xf32> -> vector<16x128xf32>
    %c0_45 = arith.constant 0 : index
    %c0_46 = arith.constant 0 : index
    %61 = vector.load %arg7[%c0_45, %c0_46] : memref<1x128xf32, #tpu.memory_space<vmem>>, vector<1x128xf32>
    %62 = vector.broadcast %61 : vector<1x128xf32> to vector<16x128xf32>
    %63 = arith.addf %60, %62 : vector<16x128xf32>
    %c0_47 = arith.constant 0 : index
    %c0_48 = arith.constant 0 : index
    %64 = vector.load %arg8[%c0_47, %c0_48] : memref<16x128xf32, #tpu.memory_space<vmem>>, vector<16x128xf32>
    tpu.vector_store %arg8[%c0_47, %c0_48], %63 {strides = array<i32>} : memref<16x128xf32, #tpu.memory_space<vmem>>, vector<16x128xf32>,
    return
  }
  func.func @transform_0(%arg0: i32) -> (i32, i32) {
    %c0_i32 = arith.constant 0 : i32
    %c0_i32_0 = arith.constant 0 : i32
    return %arg0, %c0_i32 : i32, i32
  }
  func.func @transform_1(%arg0: i32) -> (i32, i32) {
    %c0_i32 = arith.constant 0 : i32
    %c0_i32_0 = arith.constant 0 : i32
    %c0_i32_1 = arith.constant 0 : i32
    return %c0_i32, %c0_i32_0 : i32, i32
  }
  func.func @transform_2(%arg0: i32) -> (i32, i32) {
    %c0_i32 = arith.constant 0 : i32
    %c0_i32_0 = arith.constant 0 : i32
    %c0_i32_1 = arith.constant 0 : i32
    return %c0_i32, %c0_i32_0 : i32, i32
  }
  func.func @transform_3(%arg0: i32) -> (i32, i32, i32) {
    %c0_i32 = arith.constant 0 : i32
    %c0_i32_0 = arith.constant 0 : i32
    %c0_i32_1 = arith.constant 0 : i32
    %c0_i32_2 = arith.constant 0 : i32
    return %c0_i32, %c0_i32_0, %c0_i32_1 : i32, i32, i32
  }
  func.func @transform_4(%arg0: i32) -> (i32, i32, i32) {
    %c0_i32 = arith.constant 0 : i32
    %c0_i32_0 = arith.constant 0 : i32
    %c0_i32_1 = arith.constant 0 : i32
    %c0_i32_2 = arith.constant 0 : i32
    return %c0_i32, %c0_i32_0, %c0_i32_1 : i32, i32, i32
  }
  func.func @transform_5(%arg0: i32) -> (i32, i32) {
    %c0_i32 = arith.constant 0 : i32
    %c0_i32_0 = arith.constant 0 : i32
    %c0_i32_1 = arith.constant 0 : i32
    return %c0_i32, %c0_i32_0 : i32, i32
  }
  func.func @transform_6(%arg0: i32) -> (i32, i32) {
    %c0_i32 = arith.constant 0 : i32
    %c0_i32_0 = arith.constant 0 : i32
    %c0_i32_1 = arith.constant 0 : i32
    return %c0_i32, %c0_i32_0 : i32, i32
  }
  func.func @transform_7(%arg0: i32) -> (i32, i32) {
    %c0_i32 = arith.constant 0 : i32
    %c0_i32_0 = arith.constant 0 : i32
    return %arg0, %c0_i32 : i32, i32
  }
}

</mosaic_0001>

<bundles_post_ra>
// kernel: tpu_custom_call.1
= control target key start
LH: loop header
LB: loop body
LE: loop exit
PB: predicated region body
PF: predicated region fallthrough
CT: control target
= control target key end

     0   :  { %12 = vsyncpa [#allocation3], 0  ;;  %s2516_s0 = inlined_call_operand.hbm [shape: bf16[16,128], index: 0, kind: input, shape index: {}]   ;;  %s2517_s1 = inlined_call_operand.hbm [shape: bf16[128,256], index: 1, kind: input, shape index: {}]   ;;  %s2518_s2 = inlined_call_operand.vmem [shape: f32[1,256], index: 2, kind: input, shape index: {}]   ;;  %s2519_s3 = inlined_call_operand.hbm [shape: bf16[5,256,256], index: 3, kind: input, shape index: {}]   ;;  %s2520_s4 = inlined_call_operand.vmem [shape: f32[5,1,256], index: 4, kind: input, shape index: {}]   ;;  %s2521_s5 = inlined_call_operand.hbm [shape: bf16[256,128], index: 5, kind: input, shape index: {}]   ;;  %s2522_s6 = inlined_call_operand.vmem [shape: f32[1,128], index: 6, kind: input, shape index: {}]   ;;  %s2523_s7 = inlined_call_operand.hbm [shape: f32[16,128], index: 7, kind: output, shape index: {}]  }
   0x1   :  { %13 = vsyncpa [#allocation6], 0 }
   0x2   :  { %14 = vsyncpa [#allocation9], 0 }
   0x3   :  { %15 = vsyncpa [#allocation4], 0  ;;  %s2347_s24 = smov [#allocation5]   ;;  %s2229_s28 = scalar_lea.hbm %s2517_s1, 2048 }
   0x4   :  { %s33_s25 = sshll.u32 %s2347_s24, 4  ;;  %p2230_p0 = scmp.ne.s32.totalorder %s2517_s1, %s2229_s28  ;;  %s34_s25 = int_to_ptr.vmem [resolvable:$true] %s33_s25 }
   0x5   :  { %p2233_p1 = scmp.lt.u32.totalorder %s2229_s28, %s2517_s1 }
   0x7   :  { %p2235_p2 = pnand %p2233_p1, %p2230_p0 }
   0x9   :  { %2238 = shalt.err (!%p2235_p2)
}
   0xa   :  { %s2239_s10 = scalar_lea.vmem %s34_s25, 2048  ;;  %p2244_p4 = scmp.lt.s32.totalorder %s34_s25, %s34_s25 }
   0xb   :  { %p2240_p3 = scmp.ne.s32.totalorder %s34_s25, %s2239_s10  ;;  %p2245_p5 = scmp.lt.s32.totalorder %s2239_s10, %s2239_s10 }
   0xd   :  { %p2246_p6 = por %p2245_p5, %p2244_p4 }
   0xf   :  { %p2247_p7 = pnand %p2246_p6, %p2240_p3 }
  0x11   :  { %2250 = shalt.err (!%p2247_p7)
}
  0x12   :  { %s2348_s11 = smov 128   ;;  %s2349_s12 = smov 8  }
  0x13   :  { %39 = dma.hbm_to_vmem [thread:$0]  %s2517_s1, 2048, %s34_s25, [#allocation6], %s2348_s11, %s2348_s11, %s2349_s12  }
  0x14   :  { %s2350_s15 = smov [#allocation2]   ;;  %s2251_s19 = scalar_lea.hbm %s2516_s0, 128 }
  0x15   :  { %s21_s16 = sshll.u32 %s2350_s15, 4  ;;  %p2252_p8 = scmp.ne.s32.totalorder %s2516_s0, %s2251_s19  ;;  %s22_s16 = int_to_ptr.vmem [resolvable:$true] %s21_s16 }
  0x16   :  { %p2255_p9 = scmp.lt.u32.totalorder %s2251_s19, %s2516_s0 }
  0x18   :  { %p2257_p10 = pnand %p2255_p9, %p2252_p8 }
  0x1a   :  { %2260 = shalt.err (!%p2257_p10)
}
  0x1b   :  { %s2261_s24 = scalar_lea.vmem %s22_s16, 128  ;;  %p2266_p12 = scmp.lt.s32.totalorder %s22_s16, %s22_s16 }
  0x1c   :  { %p2262_p11 = scmp.ne.s32.totalorder %s22_s16, %s2261_s24  ;;  %p2267_p13 = scmp.lt.s32.totalorder %s2261_s24, %s2261_s24 }
  0x1e   :  { %p2268_p0 = por %p2267_p13, %p2266_p12 }
  0x20   :  { %p2269_p1 = pnand %p2268_p0, %p2262_p11 }
  0x22   :  { %2272 = shalt.err (!%p2269_p1)
}
  0x23   :  { %s2351_s1 = smov 64   ;;  %s2352_s25 = smov 4  }
  0x24   :  { %27 = dma.hbm_to_vmem [thread:$0]  %s2516_s0, 128, %s22_s16, [#allocation3], %s2351_s1, %s2351_s1, %s2352_s25  }
  0x25   :  { %s2353_s28 = smov [#allocation7]   ;;  %s2354_s30 = smov [#allocation8]  }
  0x26   :  { %s47_s29 = sshll.u32 %s2353_s28, 4  ;;  %s61_s8 = sshll.u32 %s2354_s30, 4  ;;  %s48_s29 = int_to_ptr.vmem [resolvable:$true] %s47_s29  ;;  %s2427_s8 = int_to_ptr.vmem [resolvable:$true] %s61_s8 }
  0x27   :  { %s2273_s13 = scalar_lea.hbm %s2519_s3, 20480 }
  0x28   :  { %p2274_p2 = scmp.ne.s32.totalorder %s2519_s3, %s2273_s13  ;;  %p2277_p3 = scmp.lt.u32.totalorder %s2273_s13, %s2519_s3 }
  0x2a   :  { %p2279_p4 = pnand %p2277_p3, %p2274_p2 }
  0x2c   :  { %2282 = shalt.err (!%p2279_p4)
}
  0x2d   :  { %s2283_s0 = scalar_lea.vmem %s48_s29, 20480  ;;  %p2288_p6 = scmp.lt.s32.totalorder %s48_s29, %s48_s29 }
  0x2e   :  { %p2284_p5 = scmp.ne.s32.totalorder %s48_s29, %s2283_s0  ;;  %p2289_p7 = scmp.lt.s32.totalorder %s2283_s0, %s2283_s0 }
  0x30   :  { %p2290_p8 = por %p2289_p7, %p2288_p6 }
  0x32   :  { %p2291_p9 = pnand %p2290_p8, %p2284_p5 }
  0x34   :  { %2294 = shalt.err (!%p2291_p9)
}
  0x35   :  { %53 = dma.hbm_to_vmem [thread:$0]  %s2519_s3, 20480, %s48_s29, [#allocation6], %s2348_s11, %s2348_s11, %s2349_s12  }
  0x36   :  { %s2295_s22 = scalar_lea.hbm %s2521_s5, 2048 }
  0x37   :  { %p2296_p10 = scmp.ne.s32.totalorder %s2521_s5, %s2295_s22  ;;  %p2299_p11 = scmp.lt.u32.totalorder %s2295_s22, %s2521_s5 }
  0x39   :  { %p2301_p12 = pnand %p2299_p11, %p2296_p10 }
  0x3b   :  { %2304 = shalt.err (!%p2301_p12)
}
  0x3c   :  { %s2305_s28 = scalar_lea.vmem %s2427_s8, 2048  ;;  %p2310_p0 = scmp.lt.s32.totalorder %s2427_s8, %s2427_s8 }
  0x3d   :  { %p2306_p13 = scmp.ne.s32.totalorder %s2427_s8, %s2305_s28  ;;  %p2311_p1 = scmp.lt.s32.totalorder %s2305_s28, %s2305_s28 }
  0x3f   :  { %p2312_p2 = por %p2311_p1, %p2310_p0 }
  0x41   :  { %p2313_p3 = pnand %p2312_p2, %p2306_p13 }
  0x43   :  { %2316 = shalt.err (!%p2313_p3)
}
  0x44   :  { %67 = dma.hbm_to_vmem [thread:$0]  %s2521_s5, 2048, %s2427_s8, [#allocation9], %s2351_s1, %s2351_s1, %s2352_s25  }
  0x45   :  { %2339 = dma.done.wait [#allocation3], 128  }
  0x46   :  { %2340 = vsyncadd [#allocation3], 4294967168 }
  0x47   :  { %2341 = dma.done.wait [#allocation6], 22528  }
  0x48   :  { %2342 = vsyncadd [#allocation6], 4294944768 }
  0x49   :  { %2343 = dma.done.wait [#allocation9], 2048  }
  0x4a   :  { %2344 = vsyncadd [#allocation9], 4294965248  ;;  %v2355_v0 = vmov 0   ;;  %v1948_v1 = vld [vmem:[#allocation5 + $0x4] ss:$8 sps:$4 sm:$0xff]   ;;  %v1972_v27 = vld [vmem:[#allocation2] sm:$0xff]  }
  0x4b   :  { %231 = vmatprep.mubr.bf16.mxu0 %v2355_v0  ;;  %v1950_v2 = vld [vmem:[#allocation5] ss:$8 sps:$4 sm:$0xff]   ;;  %199 = vmatprep.subr.bf16.mxu0 %v1948_v1  ;;  %v1951_v3 = vld [vmem:[#allocation5 + $0x14] ss:$8 sps:$4 sm:$0xff]   ;;  %v1953_v4 = vld [vmem:[#allocation5 + $0x10] ss:$8 sps:$4 sm:$0xff]  }
  0x4c   :  { %200 = vmatpush1.bf16.msra.mxu0 %v1950_v2  ;;  %v1954_v5 = vld [vmem:[#allocation5 + $0x24] ss:$8 sps:$4 sm:$0xff]   ;;  %v1956_v6 = vld [vmem:[#allocation5 + $0x20] ss:$8 sps:$4 sm:$0xff]   ;;  %v1957_v7 = vld [vmem:[#allocation5 + $0x34] ss:$8 sps:$4 sm:$0xff]  }
  0x4d   :  { %201 = vmatprep.subr.bf16.mxu0 %v1951_v3  ;;  %v1959_v8 = vld [vmem:[#allocation5 + $0x30] ss:$8 sps:$4 sm:$0xff]   ;;  %v1960_v9 = vld [vmem:[#allocation5 + $0x44] ss:$8 sps:$4 sm:$0xff]   ;;  %v1975_v11 = vld [vmem:[#allocation7] ss:$8 sps:$4 sm:$0xff]  }
  0x4e   :  { %v1973_v10 = vld [vmem:[#allocation7 + $0x4] ss:$8 sps:$4 sm:$0xff]   ;;  %v1976_v12 = vld [vmem:[#allocation7 + $0x14] ss:$8 sps:$4 sm:$0xff]   ;;  %v1962_v13 = vld [vmem:[#allocation5 + $0x40] ss:$8 sps:$4 sm:$0xff]  }
  0x4f   :  { %452 = vmatprep.subr.bf16.mxu1 %v1973_v10  ;;  %v1978_v14 = vld [vmem:[#allocation7 + $0x10] ss:$8 sps:$4 sm:$0xff]   ;;  %v1963_v15 = vld [vmem:[#allocation5 + $0x54] ss:$8 sps:$4 sm:$0xff]   ;;  %v1979_v16 = vld [vmem:[#allocation7 + $0x24] ss:$8 sps:$4 sm:$0xff]  }
  0x50   :  { %202 = vmatpush1.bf16.msra.mxu0 %v1953_v4  ;;  %453 = vmatpush1.bf16.msra.mxu1 %v1975_v11  ;;  %v1965_v17 = vld [vmem:[#allocation5 + $0x50] ss:$8 sps:$4 sm:$0xff]   ;;  %v1981_v18 = vld [vmem:[#allocation7 + $0x20] ss:$8 sps:$4 sm:$0xff]   ;;  %v1966_v19 = vld [vmem:[#allocation5 + $0x64] ss:$8 sps:$4 sm:$0xff]  }
  0x51   :  { %203 = vmatprep.subr.bf16.mxu0 %v1954_v5  ;;  %454 = vmatprep.subr.bf16.mxu1 %v1976_v12  ;;  %v1982_v20 = vld [vmem:[#allocation7 + $0x34] ss:$8 sps:$4 sm:$0xff]   ;;  %v1968_v21 = vld [vmem:[#allocation5 + $0x60] ss:$8 sps:$4 sm:$0xff]   ;;  %v1984_v22 = vld [vmem:[#allocation7 + $0x30] ss:$8 sps:$4 sm:$0xff]  }
  0x52   :  { %v1969_v23 = vld [vmem:[#allocation5 + $0x74] ss:$8 sps:$4 sm:$0xff]   ;;  %v1985_v24 = vld [vmem:[#allocation7 + $0x44] ss:$8 sps:$4 sm:$0xff]   ;;  %v1971_v25 = vld [vmem:[#allocation5 + $0x70] ss:$8 sps:$4 sm:$0xff]  }
  0x53   :  { %v1987_v26 = vld [vmem:[#allocation7 + $0x40] ss:$8 sps:$4 sm:$0xff]   ;;  %v1988_v28 = vld [vmem:[#allocation7 + $0x54] ss:$8 sps:$4 sm:$0xff]   ;;  %v1990_v29 = vld [vmem:[#allocation7 + $0x50] ss:$8 sps:$4 sm:$0xff]  }
  0x54   :  { %204 = vmatpush1.bf16.msra.mxu0 %v1956_v6  ;;  %455 = vmatpush1.bf16.msra.mxu1 %v1978_v14  ;;  %v1991_v30 = vld [vmem:[#allocation7 + $0x64] ss:$8 sps:$4 sm:$0xff]   ;;  %v1993_v31 = vld [vmem:[#allocation7 + $0x60] ss:$8 sps:$4 sm:$0xff]   ;;  %v1994_v32 = vld [vmem:[#allocation7 + $0x74] ss:$8 sps:$4 sm:$0xff]   ;;  %v103_v14 = vlaneseq }
  0x55   :  { %205 = vmatprep.subr.bf16.mxu0 %v1957_v7  ;;  %456 = vmatprep.subr.bf16.mxu1 %v1979_v16  ;;  %v1996_v33 = vld [vmem:[#allocation7 + $0x70] ss:$8 sps:$4 sm:$0xff]   ;;  %v1997_v34 = vld [vmem:[#allocation7 + $0x84] ss:$8 sps:$4 sm:$0xff]   ;;  %v1999_v35 = vld [vmem:[#allocation7 + $0x80] ss:$8 sps:$4 sm:$0xff]  }
  0x56   :  { %v2000_v36 = vld [vmem:[#allocation7 + $0x94] ss:$8 sps:$4 sm:$0xff]   ;;  %v2002_v37 = vld [vmem:[#allocation7 + $0x90] ss:$8 sps:$4 sm:$0xff]   ;;  %v2003_v38 = vld [vmem:[#allocation7 + $0xa4] ss:$8 sps:$4 sm:$0xff]  }
  0x57   :  { %v2005_v39 = vld [vmem:[#allocation7 + $0xa0] ss:$8 sps:$4 sm:$0xff]   ;;  %v2006_v40 = vld [vmem:[#allocation7 + $0xb4] ss:$8 sps:$4 sm:$0xff]   ;;  %v2008_v41 = vld [vmem:[#allocation7 + $0xb0] ss:$8 sps:$4 sm:$0xff]  }
  0x58   :  { %206 = vmatpush1.bf16.msra.mxu0 %v1959_v8  ;;  %457 = vmatpush1.bf16.msra.mxu1 %v1981_v18  ;;  %v2009_v42 = vld [vmem:[#allocation7 + $0xc4] ss:$8 sps:$4 sm:$0xff]   ;;  %v2011_v43 = vld [vmem:[#allocation7 + $0xc0] ss:$8 sps:$4 sm:$0xff]   ;;  %v2012_v44 = vld [vmem:[#allocation7 + $0xd4] ss:$8 sps:$4 sm:$0xff]  }
  0x59   :  { %207 = vmatprep.subr.bf16.mxu0 %v1960_v9  ;;  %458 = vmatprep.subr.bf16.mxu1 %v1982_v20  ;;  %v2014_v45 = vld [vmem:[#allocation7 + $0xd0] ss:$8 sps:$4 sm:$0xff]   ;;  %v2015_v46 = vld [vmem:[#allocation7 + $0xe4] ss:$8 sps:$4 sm:$0xff]   ;;  %v2017_v47 = vld [vmem:[#allocation7 + $0xe0] ss:$8 sps:$4 sm:$0xff]  }
  0x5a   :  { %v2018_v48 = vld [vmem:[#allocation7 + $0xf4] ss:$8 sps:$4 sm:$0xff]   ;;  %v2020_v49 = vld [vmem:[#allocation7 + $0xf0] ss:$8 sps:$4 sm:$0xff]   ;;  %v2021_v50 = vld [vmem:[#allocation7 + $0x100] ss:$8 sps:$4 sm:$0xff]  }
  0x5b   :  { %v2023_v51 = vld [vmem:[#allocation7 + $0x104] ss:$8 sps:$4 sm:$0xff]   ;;  %v2026_v52 = vld [vmem:[#allocation7 + $0x114] ss:$8 sps:$4 sm:$0xff]   ;;  %v2024_v53 = vld [vmem:[#allocation7 + $0x110] ss:$8 sps:$4 sm:$0xff]  }
  0x5c   :  { %208 = vmatpush1.bf16.msra.mxu0 %v1962_v13  ;;  %459 = vmatpush1.bf16.msra.mxu1 %v1984_v22  ;;  %v2029_v54 = vld [vmem:[#allocation7 + $0x124] ss:$8 sps:$4 sm:$0xff]   ;;  %v2027_v55 = vld [vmem:[#allocation7 + $0x120] ss:$8 sps:$4 sm:$0xff]   ;;  %v2032_v56 = vld [vmem:[#allocation7 + $0x134] ss:$8 sps:$4 sm:$0xff]  }
  0x5d   :  { %209 = vmatprep.subr.bf16.mxu0 %v1963_v15  ;;  %460 = vmatprep.subr.bf16.mxu1 %v1985_v24  ;;  %v2030_v57 = vld [vmem:[#allocation7 + $0x130] ss:$8 sps:$4 sm:$0xff]   ;;  %v2035_v58 = vld [vmem:[#allocation7 + $0x144] ss:$8 sps:$4 sm:$0xff]   ;;  %v2033_v59 = vld [vmem:[#allocation7 + $0x140] ss:$8 sps:$4 sm:$0xff]  }
  0x5e   :  { %v2038_v60 = vld [vmem:[#allocation7 + $0x154] ss:$8 sps:$4 sm:$0xff]   ;;  %v2036_v61 = vld [vmem:[#allocation7 + $0x150] ss:$8 sps:$4 sm:$0xff]   ;;  %v2041_v62 = vld [vmem:[#allocation7 + $0x164] ss:$8 sps:$4 sm:$0xff]  }
  0x5f   :  { %v2039_v63 = vld [vmem:[#allocation7 + $0x160] ss:$8 sps:$4 sm:$0xff]   ;;  %v2044_v0 = vld [vmem:[#allocation7 + $0x174] ss:$8 sps:$4 sm:$0xff]   ;;  %v2042_v1 = vld [vmem:[#allocation7 + $0x170] ss:$8 sps:$4 sm:$0xff]  }
  0x60   :  { %210 = vmatpush1.bf16.msra.mxu0 %v1965_v17  ;;  %461 = vmatpush1.bf16.msra.mxu1 %v1987_v26  ;;  %v2047_v2 = vld [vmem:[#allocation7 + $0x184] ss:$8 sps:$4 sm:$0xff]   ;;  %v2045_v3 = vld [vmem:[#allocation7 + $0x180] ss:$8 sps:$4 sm:$0xff]   ;;  %v2050_v4 = vld [vmem:[#allocation7 + $0x194] ss:$8 sps:$4 sm:$0xff]  }
  0x61   :  { %211 = vmatprep.subr.bf16.mxu0 %v1966_v19  ;;  %462 = vmatprep.subr.bf16.mxu1 %v1988_v28  ;;  %v2048_v5 = vld [vmem:[#allocation7 + $0x190] ss:$8 sps:$4 sm:$0xff]   ;;  %v2053_v6 = vld [vmem:[#allocation7 + $0x1a4] ss:$8 sps:$4 sm:$0xff]   ;;  %v2051_v7 = vld [vmem:[#allocation7 + $0x1a0] ss:$8 sps:$4 sm:$0xff]  }
  0x62   :  { %v2056_v8 = vld [vmem:[#allocation7 + $0x1b4] ss:$8 sps:$4 sm:$0xff]   ;;  %v2054_v9 = vld [vmem:[#allocation7 + $0x1b0] ss:$8 sps:$4 sm:$0xff]   ;;  %v2059_v10 = vld [vmem:[#allocation7 + $0x1c4] ss:$8 sps:$4 sm:$0xff]  }
  0x63   :  { %v2057_v11 = vld [vmem:[#allocation7 + $0x1c0] ss:$8 sps:$4 sm:$0xff]   ;;  %v2062_v12 = vld [vmem:[#allocation7 + $0x1d4] ss:$8 sps:$4 sm:$0xff]   ;;  %v2060_v13 = vld [vmem:[#allocation7 + $0x1d0] ss:$8 sps:$4 sm:$0xff]  }
  0x64   :  { %212 = vmatpush1.bf16.msra.mxu0 %v1968_v21  ;;  %463 = vmatpush1.bf16.msra.mxu1 %v1990_v29  ;;  %v104_v15 = vshrl.u32 %v103_v14, 7  ;;  %v101_v17 = vld [vmem:[%s2518_s2] sm:$0x3]  ;;  %s2356_s0 = smov [#allocation10]  }
  0x65   :  { %213 = vmatprep.subr.bf16.mxu0 %v1969_v23  ;;  %464 = vmatprep.subr.bf16.mxu1 %v1991_v30  ;;  %s1704_s16 = sshll.u32 %s2356_s0, 4  ;;  %s1705_s16 = int_to_ptr.vmem [resolvable:$true] %s1704_s16 }
  0x66   :  { %v2464_v16 = vsub.s32 0, %v104_v15  ;;  %v2469_v18 = vsub.s32 1, %v104_v15  ;;  %s2317_s19 = scalar_lea.vmem %s1705_s16, 256  ;;  %p2322_p5 = scmp.lt.s32.totalorder %s1705_s16, %s1705_s16 }
  0x67   :  { %p2318_p4 = scmp.ne.s32.totalorder %s1705_s16, %s2317_s19  ;;  %p2323_p6 = scmp.lt.s32.totalorder %s2317_s19, %s2317_s19 }
  0x68   :  { %214 = vmatpush1.bf16.msra.mxu0 %v1971_v25  ;;  %465 = vmatpush1.bf16.msra.mxu1 %v1993_v31  ;;  %v106_v19 = vrot.slane %v101_v17, %v2464_v16  ;;  %v110_v20 = vrot.slane %v101_v17, %v2469_v18 }
  0x69   :  { %466 = vmatprep.subr.bf16.mxu1 %v1994_v32  ;;  %707 = vmatprep.subr.bf16.mxu0 %v2023_v51  ;;  %v2089_v51 = vld [vmem:[#allocation7 + $0x264] ss:$8 sps:$4 sm:$0xff]   ;;  %p2324_p7 = por %p2323_p6, %p2322_p5 }
  0x6b   :  { %232 = vmatmul.mubr.bf16.vlgmr.msra.gmra.mrb[0].mxu0 %v1972_v27  ;;  %p2325_p8 = pnand %p2324_p7, %p2318_p4 }
  0x6c   :  { %467 = vmatpush1.bf16.msra.mxu1 %v1996_v33  ;;  %708 = vmatpush1.bf16.msra.mxu0 %v2021_v50  ;;  %v2084_v50 = vld [vmem:[#allocation7 + $0x250] ss:$8 sps:$4 sm:$0xff]  }
  0x6d   :  { %468 = vmatprep.subr.bf16.mxu1 %v1997_v34  ;;  %709 = vmatprep.subr.bf16.mxu0 %v2026_v52  ;;  %v2087_v52 = vld [vmem:[#allocation7 + $0x260] ss:$8 sps:$4 sm:$0xff]  }
  0x70   :  { %469 = vmatpush1.bf16.msra.mxu1 %v1999_v35  ;;  %710 = vmatpush1.bf16.msra.mxu0 %v2024_v53  ;;  %v2065_v35 = vld [vmem:[#allocation7 + $0x1e4] ss:$8 sps:$4 sm:$0xff]   ;;  %v2092_v53 = vld [vmem:[#allocation7 + $0x274] ss:$8 sps:$4 sm:$0xff]  }
  0x71   :  { %470 = vmatprep.subr.bf16.mxu1 %v2000_v36  ;;  %711 = vmatprep.subr.bf16.mxu0 %v2029_v54  ;;  %v2063_v36 = vld [vmem:[#allocation7 + $0x1e0] ss:$8 sps:$4 sm:$0xff]   ;;  %v2090_v54 = vld [vmem:[#allocation7 + $0x270] ss:$8 sps:$4 sm:$0xff]  }
  0x74   :  { %471 = vmatpush1.bf16.msra.mxu1 %v2002_v37  ;;  %712 = vmatpush1.bf16.msra.mxu0 %v2027_v55  ;;  %v2068_v37 = vld [vmem:[#allocation7 + $0x1f4] ss:$8 sps:$4 sm:$0xff]   ;;  %v2095_v55 = vld [vmem:[#allocation7 + $0x284] ss:$8 sps:$4 sm:$0xff]  }
  0x75   :  { %472 = vmatprep.subr.bf16.mxu1 %v2003_v38  ;;  %713 = vmatprep.subr.bf16.mxu0 %v2032_v56  ;;  %v2066_v38 = vld [vmem:[#allocation7 + $0x1f0] ss:$8 sps:$4 sm:$0xff]   ;;  %v2093_v56 = vld [vmem:[#allocation7 + $0x280] ss:$8 sps:$4 sm:$0xff]  }
  0x78   :  { %473 = vmatpush1.bf16.msra.mxu1 %v2005_v39  ;;  %714 = vmatpush1.bf16.msra.mxu0 %v2030_v57  ;;  %v2069_v39 = vld [vmem:[#allocation7 + $0x200] ss:$8 sps:$4 sm:$0xff]   ;;  %v2098_v57 = vld [vmem:[#allocation7 + $0x294] ss:$8 sps:$4 sm:$0xff]  }
  0x79   :  { %474 = vmatprep.subr.bf16.mxu1 %v2006_v40  ;;  %715 = vmatprep.subr.bf16.mxu0 %v2035_v58  ;;  %v2071_v40 = vld [vmem:[#allocation7 + $0x204] ss:$8 sps:$4 sm:$0xff]   ;;  %v2096_v58 = vld [vmem:[#allocation7 + $0x290] ss:$8 sps:$4 sm:$0xff]  }
  0x7c   :  { %475 = vmatpush1.bf16.msra.mxu1 %v2008_v41  ;;  %716 = vmatpush1.bf16.msra.mxu0 %v2033_v59  ;;  %v2074_v41 = vld [vmem:[#allocation7 + $0x214] ss:$8 sps:$4 sm:$0xff]   ;;  %v2101_v59 = vld [vmem:[#allocation7 + $0x2a4] ss:$8 sps:$4 sm:$0xff]  }
  0x7d   :  { %476 = vmatprep.subr.bf16.mxu1 %v2009_v42  ;;  %717 = vmatprep.subr.bf16.mxu0 %v2038_v60  ;;  %v2072_v42 = vld [vmem:[#allocation7 + $0x210] ss:$8 sps:$4 sm:$0xff]   ;;  %v2099_v60 = vld [vmem:[#allocation7 + $0x2a0] ss:$8 sps:$4 sm:$0xff]  }
  0x80   :  { %477 = vmatpush1.bf16.msra.mxu1 %v2011_v43  ;;  %718 = vmatpush1.bf16.msra.mxu0 %v2036_v61  ;;  %v2077_v43 = vld [vmem:[#allocation7 + $0x224] ss:$8 sps:$4 sm:$0xff]   ;;  %v2104_v61 = vld [vmem:[#allocation7 + $0x2b4] ss:$8 sps:$4 sm:$0xff]  }
  0x81   :  { %478 = vmatprep.subr.bf16.mxu1 %v2012_v44  ;;  %719 = vmatprep.subr.bf16.mxu0 %v2041_v62  ;;  %v2075_v44 = vld [vmem:[#allocation7 + $0x220] ss:$8 sps:$4 sm:$0xff]   ;;  %v2102_v62 = vld [vmem:[#allocation7 + $0x2b0] ss:$8 sps:$4 sm:$0xff]  }
  0x84   :  { %479 = vmatpush1.bf16.msra.mxu1 %v2014_v45  ;;  %720 = vmatpush1.bf16.msra.mxu0 %v2039_v63  ;;  %v2080_v45 = vld [vmem:[#allocation7 + $0x234] ss:$8 sps:$4 sm:$0xff]   ;;  %v2107_v63 = vld [vmem:[#allocation7 + $0x2c4] ss:$8 sps:$4 sm:$0xff]  }
  0x85   :  { %480 = vmatprep.subr.bf16.mxu1 %v2015_v46  ;;  %721 = vmatprep.subr.bf16.mxu0 %v2044_v0  ;;  %v2078_v46 = vld [vmem:[#allocation7 + $0x230] ss:$8 sps:$4 sm:$0xff]   ;;  %v2105_v0 = vld [vmem:[#allocation7 + $0x2c0] ss:$8 sps:$4 sm:$0xff]  }
  0x88   :  { %481 = vmatpush1.bf16.msra.mxu1 %v2017_v47  ;;  %722 = vmatpush1.bf16.msra.mxu0 %v2042_v1  ;;  %v2083_v47 = vld [vmem:[#allocation7 + $0x244] ss:$8 sps:$4 sm:$0xff]   ;;  %v2110_v1 = vld [vmem:[#allocation7 + $0x2d4] ss:$8 sps:$4 sm:$0xff]  }
  0x89   :  { %482 = vmatprep.subr.bf16.mxu1 %v2018_v48  ;;  %723 = vmatprep.subr.bf16.mxu0 %v2047_v2  ;;  %v2081_v48 = vld [vmem:[#allocation7 + $0x240] ss:$8 sps:$4 sm:$0xff]   ;;  %v2108_v2 = vld [vmem:[#allocation7 + $0x2d0] ss:$8 sps:$4 sm:$0xff]  }
  0x8c   :  { %483 = vmatpush1.bf16.msra.mxu1 %v2020_v49  ;;  %724 = vmatpush1.bf16.msra.mxu0 %v2045_v3  ;;  %v2086_v49 = vld [vmem:[#allocation7 + $0x254] ss:$8 sps:$4 sm:$0xff]   ;;  %v280_v3 = vld [vmem:[%s2520_s4] sm:$0x3] }
  0x8d   :  { %725 = vmatprep.subr.bf16.mxu0 %v2050_v4  ;;  %962 = vmatprep.subr.bf16.mxu1 %v2071_v40  ;;  %v285_v4 = vrot.slane %v280_v3, %v2464_v16  ;;  %v2140_v40 = vld [vmem:[#allocation7 + $0x374] ss:$8 sps:$4 sm:$0xff]  }
  0x90   :  { %726 = vmatpush1.bf16.msra.mxu0 %v2048_v5  ;;  %v289_v5 = vrot.slane %v280_v3, %v2469_v18 }
  0x91   :  { %727 = vmatprep.subr.bf16.mxu0 %v2053_v6 }
  0x94   :  { %728 = vmatpush1.bf16.msra.mxu0 %v2051_v7 }
  0x95   :  { %729 = vmatprep.subr.bf16.mxu0 %v2056_v8 }
  0x98   :  { %730 = vmatpush1.bf16.msra.mxu0 %v2054_v9 }
  0x99   :  { %731 = vmatprep.subr.bf16.mxu0 %v2059_v10 }
  0x9c   :  { %732 = vmatpush1.bf16.msra.mxu0 %v2057_v11 }
  0x9d   :  { %733 = vmatprep.subr.bf16.mxu0 %v2062_v12 }
  0xa0   :  { %734 = vmatpush1.bf16.msra.mxu0 %v2060_v13 }
  0xa1   :  { %735 = vmatprep.subr.bf16.mxu0 %v2065_v35  ;;  %v2129_v35 = vld [vmem:[#allocation7 + $0x340] ss:$8 sps:$4 sm:$0xff]  }
  0xa4   :  { %736 = vmatpush1.bf16.msra.mxu0 %v2063_v36  ;;  %v2134_v36 = vld [vmem:[#allocation7 + $0x354] ss:$8 sps:$4 sm:$0xff]  }
  0xa5   :  { %737 = vmatprep.subr.bf16.mxu0 %v2068_v37  ;;  %v2132_v37 = vld [vmem:[#allocation7 + $0x350] ss:$8 sps:$4 sm:$0xff]  }
  0xa8   :  { %738 = vmatpush1.bf16.msra.mxu0 %v2066_v38  ;;  %v2137_v38 = vld [vmem:[#allocation7 + $0x364] ss:$8 sps:$4 sm:$0xff]  }
 0x13e   :  { %v233_v21 = vpop.f32.mrb[0].mxu0 }
 0x13f   :  { %v234_v22 = vadd.f32 %v233_v21, %v106_v19  ;;  %v235_v23 = vpop.f32.mrb[1].mxu0 }
 0x140   :  { %v236_v24 = vadd.f32 %v235_v23, %v110_v20  ;;  %v237_v25 = vpop.f32.mrb[2].mxu0  ;;  %v2111_v23 = vld [vmem:[#allocation7 + $0x2e0] ss:$8 sps:$4 sm:$0xff]  }
 0x141   :  { %v238_v26 = vadd.f32 %v237_v25, %v106_v19  ;;  %v239_v27 = vpop.f32.mrb[3].mxu0  ;;  %v242_v29 = vmax.f32 %v234_v22, 0.0  ;;  %v2113_v22 = vld [vmem:[#allocation7 + $0x2e4] ss:$8 sps:$4 sm:$0xff]   ;;  %v2114_v25 = vld [vmem:[#allocation7 + $0x2f0] ss:$8 sps:$4 sm:$0xff]  }
 0x142   :  { %v240_v28 = vadd.f32 %v239_v27, %v110_v20  ;;  %v243_v31 = vmax.f32 %v236_v24, 0.0  ;;  %v2116_v24 = vld [vmem:[#allocation7 + $0x2f4] ss:$8 sps:$4 sm:$0xff]   ;;  %v2119_v27 = vld [vmem:[#allocation7 + $0x304] ss:$8 sps:$4 sm:$0xff]  }
 0x143   :  { %v244_v30 = vmax.f32 %v238_v26, 0.0  ;;  %v2117_v26 = vld [vmem:[#allocation7 + $0x300] ss:$8 sps:$4 sm:$0xff]   ;;  %1217 = vmatprep.subr.bf16.mxu0 %v2119_v27  ;;  %v2188_v27 = vld [vmem:[#allocation7 + $0x474] ss:$8 sps:$4 sm:$0xff]  }
 0x144   :  { %v245_v32 = vmax.f32 %v240_v28, 0.0  ;;  %v2122_v28 = vld [vmem:[#allocation7 + $0x314] ss:$8 sps:$4 sm:$0xff]  }
 0x145   :  { %v246_v33 = vpack.c.bf16 %v244_v30, %v242_v29  ;;  %v2120_v29 = vld [vmem:[#allocation7 + $0x310] ss:$8 sps:$4 sm:$0xff]   ;;  %v2125_v30 = vld [vmem:[#allocation7 + $0x324] ss:$8 sps:$4 sm:$0xff]  }
 0x146   :  { %v247_v34 = vpack.c.bf16 %v245_v32, %v243_v31  ;;  %v2123_v31 = vld [vmem:[#allocation7 + $0x320] ss:$8 sps:$4 sm:$0xff]   ;;  %v2128_v32 = vld [vmem:[#allocation7 + $0x334] ss:$8 sps:$4 sm:$0xff]  }
 0x148   :  { %484 = vmatprep.mubr.bf16.mxu1 %v247_v34  ;;  %v2131_v34 = vld [vmem:[#allocation7 + $0x344] ss:$8 sps:$4 sm:$0xff]  }
 0x149   :  { %485 = vmatmul.mubr.bf16.vlgmr.msra.gmra.mrb[0].mxu1 %v246_v33  ;;  %v2126_v33 = vld [vmem:[#allocation7 + $0x330] ss:$8 sps:$4 sm:$0xff]  }
 0x14a   :  { %963 = vmatpush1.bf16.msra.mxu1 %v2069_v39  ;;  %v2135_v39 = vld [vmem:[#allocation7 + $0x360] ss:$8 sps:$4 sm:$0xff]  }
 0x14b   :  { %964 = vmatprep.subr.bf16.mxu1 %v2074_v41  ;;  %v2138_v41 = vld [vmem:[#allocation7 + $0x370] ss:$8 sps:$4 sm:$0xff]  }
 0x14e   :  { %965 = vmatpush1.bf16.msra.mxu1 %v2072_v42  ;;  %v2143_v42 = vld [vmem:[#allocation7 + $0x384] ss:$8 sps:$4 sm:$0xff]  }
 0x14f   :  { %966 = vmatprep.subr.bf16.mxu1 %v2077_v43  ;;  %v2141_v43 = vld [vmem:[#allocation7 + $0x380] ss:$8 sps:$4 sm:$0xff]  }
 0x152   :  { %967 = vmatpush1.bf16.msra.mxu1 %v2075_v44  ;;  %v2146_v44 = vld [vmem:[#allocation7 + $0x394] ss:$8 sps:$4 sm:$0xff]  }
 0x153   :  { %968 = vmatprep.subr.bf16.mxu1 %v2080_v45  ;;  %v2144_v45 = vld [vmem:[#allocation7 + $0x390] ss:$8 sps:$4 sm:$0xff]  }
 0x156   :  { %969 = vmatpush1.bf16.msra.mxu1 %v2078_v46  ;;  %v2149_v46 = vld [vmem:[#allocation7 + $0x3a4] ss:$8 sps:$4 sm:$0xff]  }
 0x157   :  { %970 = vmatprep.subr.bf16.mxu1 %v2083_v47  ;;  %v2147_v47 = vld [vmem:[#allocation7 + $0x3a0] ss:$8 sps:$4 sm:$0xff]  }
 0x15a   :  { %971 = vmatpush1.bf16.msra.mxu1 %v2081_v48  ;;  %v2152_v48 = vld [vmem:[#allocation7 + $0x3b4] ss:$8 sps:$4 sm:$0xff]  }
 0x15b   :  { %972 = vmatprep.subr.bf16.mxu1 %v2086_v49  ;;  %v2150_v49 = vld [vmem:[#allocation7 + $0x3b0] ss:$8 sps:$4 sm:$0xff]  }
 0x15e   :  { %973 = vmatpush1.bf16.msra.mxu1 %v2084_v50  ;;  %v2155_v50 = vld [vmem:[#allocation7 + $0x3c4] ss:$8 sps:$4 sm:$0xff]  }
 0x15f   :  { %974 = vmatprep.subr.bf16.mxu1 %v2089_v51  ;;  %v2153_v51 = vld [vmem:[#allocation7 + $0x3c0] ss:$8 sps:$4 sm:$0xff]  }
 0x162   :  { %975 = vmatpush1.bf16.msra.mxu1 %v2087_v52  ;;  %v2158_v52 = vld [vmem:[#allocation7 + $0x3d4] ss:$8 sps:$4 sm:$0xff]  }
 0x163   :  { %976 = vmatprep.subr.bf16.mxu1 %v2092_v53  ;;  %v2156_v53 = vld [vmem:[#allocation7 + $0x3d0] ss:$8 sps:$4 sm:$0xff]  }
 0x166   :  { %977 = vmatpush1.bf16.msra.mxu1 %v2090_v54  ;;  %v1767_v54 = vld [vmem:[%s2520_s4 + $0x2] sm:$0x3] }
 0x167   :  { %978 = vmatprep.subr.bf16.mxu1 %v2095_v55  ;;  %v540_v55 = vrot.slane %v1767_v54, %v2464_v16 }
 0x16a   :  { %979 = vmatpush1.bf16.msra.mxu1 %v2093_v56  ;;  %v544_v56 = vrot.slane %v1767_v54, %v2469_v18 }
 0x16b   :  { %980 = vmatprep.subr.bf16.mxu1 %v2098_v57 }
 0x16e   :  { %981 = vmatpush1.bf16.msra.mxu1 %v2096_v58 }
 0x16f   :  { %982 = vmatprep.subr.bf16.mxu1 %v2101_v59 }
 0x172   :  { %983 = vmatpush1.bf16.msra.mxu1 %v2099_v60 }
 0x173   :  { %984 = vmatprep.subr.bf16.mxu1 %v2104_v61 }
 0x176   :  { %985 = vmatpush1.bf16.msra.mxu1 %v2102_v62 }
 0x177   :  { %986 = vmatprep.subr.bf16.mxu1 %v2107_v63 }
 0x17a   :  { %987 = vmatpush1.bf16.msra.mxu1 %v2105_v0 }
 0x17b   :  { %988 = vmatprep.subr.bf16.mxu1 %v2110_v1 }
 0x17e   :  { %989 = vmatpush1.bf16.msra.mxu1 %v2108_v2 }
 0x17f   :  { %990 = vmatprep.subr.bf16.mxu1 %v2113_v22  ;;  %v2177_v22 = vld [vmem:[#allocation7 + $0x440] ss:$8 sps:$4 sm:$0xff]  }
 0x182   :  { %991 = vmatpush1.bf16.msra.mxu1 %v2111_v23  ;;  %v2182_v23 = vld [vmem:[#allocation7 + $0x454] ss:$8 sps:$4 sm:$0xff]  }
 0x183   :  { %992 = vmatprep.subr.bf16.mxu1 %v2116_v24  ;;  %v2180_v24 = vld [vmem:[#allocation7 + $0x450] ss:$8 sps:$4 sm:$0xff]  }
 0x186   :  { %993 = vmatpush1.bf16.msra.mxu1 %v2114_v25  ;;  %v2185_v25 = vld [vmem:[#allocation7 + $0x464] ss:$8 sps:$4 sm:$0xff]  }
 0x21c   :  { %v486_v6 = vpop.f32.mrb[0].mxu1 }
 0x21d   :  { %v487_v7 = vadd.f32 %v486_v6, %v285_v4  ;;  %v488_v8 = vpop.f32.mrb[1].mxu1 }
 0x21e   :  { %v489_v9 = vadd.f32 %v488_v8, %v289_v5  ;;  %v490_v10 = vpop.f32.mrb[2].mxu1  ;;  %v2159_v8 = vld [vmem:[#allocation7 + $0x3e0] ss:$8 sps:$4 sm:$0xff]  }
 0x21f   :  { %v491_v11 = vadd.f32 %v490_v10, %v285_v4  ;;  %v492_v12 = vpop.f32.mrb[3].mxu1  ;;  %v495_v14 = vmax.f32 %v487_v7, 0.0  ;;  %v2161_v7 = vld [vmem:[#allocation7 + $0x3e4] ss:$8 sps:$4 sm:$0xff]   ;;  %v2162_v10 = vld [vmem:[#allocation7 + $0x3f0] ss:$8 sps:$4 sm:$0xff]  }
 0x220   :  { %v493_v13 = vadd.f32 %v492_v12, %v289_v5  ;;  %v496_v17 = vmax.f32 %v489_v9, 0.0  ;;  %v2164_v9 = vld [vmem:[#allocation7 + $0x3f4] ss:$8 sps:$4 sm:$0xff]   ;;  %v2167_v12 = vld [vmem:[#allocation7 + $0x404] ss:$8 sps:$4 sm:$0xff]  }
 0x221   :  { %v497_v15 = vmax.f32 %v491_v11, 0.0  ;;  %v2165_v11 = vld [vmem:[#allocation7 + $0x400] ss:$8 sps:$4 sm:$0xff]   ;;  %1472 = vmatprep.subr.bf16.mxu1 %v2167_v12 }
 0x222   :  { %v498_v19 = vmax.f32 %v493_v13, 0.0  ;;  %v2170_v13 = vld [vmem:[#allocation7 + $0x414] ss:$8 sps:$4 sm:$0xff]  }
 0x223   :  { %v499_v20 = vpack.c.bf16 %v497_v15, %v495_v14  ;;  %v2168_v14 = vld [vmem:[#allocation7 + $0x410] ss:$8 sps:$4 sm:$0xff]   ;;  %v2173_v15 = vld [vmem:[#allocation7 + $0x424] ss:$8 sps:$4 sm:$0xff]  }
 0x224   :  { %v500_v21 = vpack.c.bf16 %v498_v19, %v496_v17  ;;  %v2171_v17 = vld [vmem:[#allocation7 + $0x420] ss:$8 sps:$4 sm:$0xff]   ;;  %v2176_v19 = vld [vmem:[#allocation7 + $0x434] ss:$8 sps:$4 sm:$0xff]  }
 0x226   :  { %739 = vmatprep.mubr.bf16.mxu0 %v500_v21  ;;  %v2179_v21 = vld [vmem:[#allocation7 + $0x444] ss:$8 sps:$4 sm:$0xff]  }
 0x227   :  { %740 = vmatmul.mubr.bf16.vlgmr.msra.gmra.mrb[4].mxu0 %v499_v20  ;;  %v2174_v20 = vld [vmem:[#allocation7 + $0x430] ss:$8 sps:$4 sm:$0xff]  }
 0x228   :  { %1218 = vmatpush1.bf16.msra.mxu0 %v2117_v26  ;;  %v2183_v26 = vld [vmem:[#allocation7 + $0x460] ss:$8 sps:$4 sm:$0xff]  }
 0x229   :  { %1219 = vmatprep.subr.bf16.mxu0 %v2122_v28  ;;  %v2186_v28 = vld [vmem:[#allocation7 + $0x470] ss:$8 sps:$4 sm:$0xff]  }
 0x22c   :  { %1220 = vmatpush1.bf16.msra.mxu0 %v2120_v29  ;;  %v2191_v29 = vld [vmem:[#allocation7 + $0x484] ss:$8 sps:$4 sm:$0xff]  }
 0x22d   :  { %1221 = vmatprep.subr.bf16.mxu0 %v2125_v30  ;;  %v2189_v30 = vld [vmem:[#allocation7 + $0x480] ss:$8 sps:$4 sm:$0xff]  }
 0x230   :  { %1222 = vmatpush1.bf16.msra.mxu0 %v2123_v31  ;;  %v2194_v31 = vld [vmem:[#allocation7 + $0x494] ss:$8 sps:$4 sm:$0xff]  }
 0x231   :  { %1223 = vmatprep.subr.bf16.mxu0 %v2128_v32  ;;  %v2192_v32 = vld [vmem:[#allocation7 + $0x490] ss:$8 sps:$4 sm:$0xff]  }
 0x234   :  { %1224 = vmatpush1.bf16.msra.mxu0 %v2126_v33  ;;  %v2197_v33 = vld [vmem:[#allocation7 + $0x4a4] ss:$8 sps:$4 sm:$0xff]  }
 0x235   :  { %1225 = vmatprep.subr.bf16.mxu0 %v2131_v34  ;;  %v2195_v34 = vld [vmem:[#allocation7 + $0x4a0] ss:$8 sps:$4 sm:$0xff]  }
 0x238   :  { %1226 = vmatpush1.bf16.msra.mxu0 %v2129_v35  ;;  %v2200_v35 = vld [vmem:[#allocation7 + $0x4b4] ss:$8 sps:$4 sm:$0xff]  }
 0x239   :  { %1227 = vmatprep.subr.bf16.mxu0 %v2134_v36  ;;  %v2198_v36 = vld [vmem:[#allocation7 + $0x4b0] ss:$8 sps:$4 sm:$0xff]  }
 0x23c   :  { %1228 = vmatpush1.bf16.msra.mxu0 %v2132_v37  ;;  %v2203_v37 = vld [vmem:[#allocation7 + $0x4c4] ss:$8 sps:$4 sm:$0xff]  }
 0x23d   :  { %1229 = vmatprep.subr.bf16.mxu0 %v2137_v38  ;;  %v2201_v38 = vld [vmem:[#allocation7 + $0x4c0] ss:$8 sps:$4 sm:$0xff]  }
 0x240   :  { %1230 = vmatpush1.bf16.msra.mxu0 %v2135_v39  ;;  %v2206_v39 = vld [vmem:[#allocation7 + $0x4d4] ss:$8 sps:$4 sm:$0xff]  }
 0x241   :  { %1231 = vmatprep.subr.bf16.mxu0 %v2140_v40  ;;  %v2204_v40 = vld [vmem:[#allocation7 + $0x4d0] ss:$8 sps:$4 sm:$0xff]  }
 0x244   :  { %1232 = vmatpush1.bf16.msra.mxu0 %v2138_v41  ;;  %v1800_v41 = vld [vmem:[%s2520_s4 + $0x4] sm:$0x3] }
 0x245   :  { %1233 = vmatprep.subr.bf16.mxu0 %v2143_v42  ;;  %v795_v42 = vrot.slane %v1800_v41, %v2464_v16 }
 0x248   :  { %1234 = vmatpush1.bf16.msra.mxu0 %v2141_v43  ;;  %v799_v43 = vrot.slane %v1800_v41, %v2469_v18 }
 0x249   :  { %1235 = vmatprep.subr.bf16.mxu0 %v2146_v44 }
 0x24c   :  { %1236 = vmatpush1.bf16.msra.mxu0 %v2144_v45 }
 0x24d   :  { %1237 = vmatprep.subr.bf16.mxu0 %v2149_v46 }
 0x250   :  { %1238 = vmatpush1.bf16.msra.mxu0 %v2147_v47 }
 0x251   :  { %1239 = vmatprep.subr.bf16.mxu0 %v2152_v48 }
 0x254   :  { %1240 = vmatpush1.bf16.msra.mxu0 %v2150_v49 }
 0x255   :  { %1241 = vmatprep.subr.bf16.mxu0 %v2155_v50 }
 0x258   :  { %1242 = vmatpush1.bf16.msra.mxu0 %v2153_v51 }
 0x259   :  { %1243 = vmatprep.subr.bf16.mxu0 %v2158_v52 }
 0x25c   :  { %1244 = vmatpush1.bf16.msra.mxu0 %v2156_v53 }
 0x25d   :  { %1245 = vmatprep.subr.bf16.mxu0 %v2161_v7  ;;  %v2222_v7 = vld [vmem:[#allocation8 + $0x20] sm:$0xff]  }
 0x260   :  { %1246 = vmatpush1.bf16.msra.mxu0 %v2159_v8  ;;  %v2223_v8 = vld [vmem:[#allocation8 + $0x68] sm:$0xff]  }
 0x261   :  { %1247 = vmatprep.subr.bf16.mxu0 %v2164_v9  ;;  %v1833_v9 = vld [vmem:[%s2520_s4 + $0x6] sm:$0x3] }
 0x264   :  { %1248 = vmatpush1.bf16.msra.mxu0 %v2162_v10  ;;  %v1050_v10 = vrot.slane %v1833_v9, %v2464_v16 }
 0x2fa   :  { %v741_v57 = vpop.f32.mrb[4].mxu0 }
 0x2fb   :  { %v742_v58 = vadd.f32 %v741_v57, %v540_v55  ;;  %v743_v59 = vpop.f32.mrb[5].mxu0 }
 0x2fc   :  { %v744_v60 = vadd.f32 %v743_v59, %v544_v56  ;;  %v745_v61 = vpop.f32.mrb[6].mxu0  ;;  %v2207_v59 = vld [vmem:[#allocation7 + $0x4e0] ss:$8 sps:$4 sm:$0xff]  }
 0x2fd   :  { %v746_v62 = vadd.f32 %v745_v61, %v540_v55  ;;  %v747_v63 = vpop.f32.mrb[7].mxu0  ;;  %v750_v1 = vmax.f32 %v742_v58, 0.0  ;;  %v2209_v58 = vld [vmem:[#allocation7 + $0x4e4] ss:$8 sps:$4 sm:$0xff]   ;;  %v2210_v61 = vld [vmem:[#allocation7 + $0x4f0] ss:$8 sps:$4 sm:$0xff]  }
 0x2fe   :  { %v748_v0 = vadd.f32 %v747_v63, %v544_v56  ;;  %v751_v3 = vmax.f32 %v744_v60, 0.0  ;;  %v2212_v60 = vld [vmem:[#allocation7 + $0x4f4] ss:$8 sps:$4 sm:$0xff]   ;;  %v2214_v63 = vld [vmem:[#allocation8] sm:$0xff]  }
 0x2ff   :  { %v752_v2 = vmax.f32 %v746_v62, 0.0  ;;  %v2213_v62 = vld [vmem:[#allocation8 + $0x40] sm:$0xff]  }
 0x300   :  { %v753_v4 = vmax.f32 %v748_v0, 0.0  ;;  %v2215_v0 = vld [vmem:[#allocation8 + $0x48] sm:$0xff]   ;;  %1916 = vmatprep.subr.bf16.mxu0 %v2213_v62 }
 0x301   :  { %v754_v5 = vpack.c.bf16 %v752_v2, %v750_v1  ;;  %v2216_v1 = vld [vmem:[#allocation8 + $0x8] sm:$0xff]   ;;  %v2217_v2 = vld [vmem:[#allocation8 + $0x50] sm:$0xff]  }
 0x302   :  { %v755_v6 = vpack.c.bf16 %v753_v4, %v751_v3  ;;  %v2218_v3 = vld [vmem:[#allocation8 + $0x10] sm:$0xff]   ;;  %v2219_v4 = vld [vmem:[#allocation8 + $0x58] sm:$0xff]  }
 0x304   :  { %994 = vmatprep.mubr.bf16.mxu1 %v755_v6  ;;  %v2221_v6 = vld [vmem:[#allocation8 + $0x60] sm:$0xff]  }
 0x305   :  { %995 = vmatmul.mubr.bf16.vlgmr.msra.gmra.mrb[4].mxu1 %v754_v5  ;;  %v2220_v5 = vld [vmem:[#allocation8 + $0x18] sm:$0xff]  }
 0x306   :  { %1473 = vmatpush1.bf16.msra.mxu1 %v2165_v11  ;;  %v1054_v11 = vrot.slane %v1833_v9, %v2469_v18 }
 0x307   :  { %1474 = vmatprep.subr.bf16.mxu1 %v2170_v13 }
 0x30a   :  { %1475 = vmatpush1.bf16.msra.mxu1 %v2168_v14 }
 0x30b   :  { %1476 = vmatprep.subr.bf16.mxu1 %v2173_v15 }
 0x30e   :  { %1477 = vmatpush1.bf16.msra.mxu1 %v2171_v17 }
 0x30f   :  { %1478 = vmatprep.subr.bf16.mxu1 %v2176_v19 }
 0x312   :  { %1479 = vmatpush1.bf16.msra.mxu1 %v2174_v20 }
 0x313   :  { %1480 = vmatprep.subr.bf16.mxu1 %v2179_v21 }
 0x316   :  { %1481 = vmatpush1.bf16.msra.mxu1 %v2177_v22 }
 0x317   :  { %1482 = vmatprep.subr.bf16.mxu1 %v2182_v23 }
 0x31a   :  { %1483 = vmatpush1.bf16.msra.mxu1 %v2180_v24 }
 0x31b   :  { %1484 = vmatprep.subr.bf16.mxu1 %v2185_v25 }
 0x31e   :  { %1485 = vmatpush1.bf16.msra.mxu1 %v2183_v26 }
 0x31f   :  { %1486 = vmatprep.subr.bf16.mxu1 %v2188_v27 }
 0x322   :  { %1487 = vmatpush1.bf16.msra.mxu1 %v2186_v28  ;;  %v2224_v28 = vld [vmem:[#allocation8 + $0x28] sm:$0xff]  }
 0x323   :  { %1488 = vmatprep.subr.bf16.mxu1 %v2191_v29  ;;  %v2225_v29 = vld [vmem:[#allocation8 + $0x70] sm:$0xff]  }
 0x326   :  { %1489 = vmatpush1.bf16.msra.mxu1 %v2189_v30  ;;  %v2226_v30 = vld [vmem:[#allocation8 + $0x30] sm:$0xff]  }
 0x327   :  { %1490 = vmatprep.subr.bf16.mxu1 %v2194_v31  ;;  %v2227_v31 = vld [vmem:[#allocation8 + $0x78] sm:$0xff]  }
 0x32a   :  { %1491 = vmatpush1.bf16.msra.mxu1 %v2192_v32  ;;  %v2228_v32 = vld [vmem:[#allocation8 + $0x38] sm:$0xff]  }
 0x32b   :  { %1492 = vmatprep.subr.bf16.mxu1 %v2197_v33  ;;  %v1866_v33 = vld [vmem:[%s2520_s4 + $0x8] sm:$0x3] }
 0x32e   :  { %1493 = vmatpush1.bf16.msra.mxu1 %v2195_v34  ;;  %v1305_v34 = vrot.slane %v1866_v33, %v2464_v16  ;;  %v1899_v16 = vld [vmem:[%s2522_s6] ss:$0 sm:$0xff] }
 0x32f   :  { %1494 = vmatprep.subr.bf16.mxu1 %v2200_v35  ;;  %v1309_v35 = vrot.slane %v1866_v33, %v2469_v18 }
 0x332   :  { %1495 = vmatpush1.bf16.msra.mxu1 %v2198_v36 }
 0x333   :  { %1496 = vmatprep.subr.bf16.mxu1 %v2203_v37 }
 0x336   :  { %1497 = vmatpush1.bf16.msra.mxu1 %v2201_v38 }
 0x337   :  { %1498 = vmatprep.subr.bf16.mxu1 %v2206_v39 }
 0x33a   :  { %1499 = vmatpush1.bf16.msra.mxu1 %v2204_v40 }
 0x33b   :  { %1500 = vmatprep.subr.bf16.mxu1 %v2209_v58 }
 0x33e   :  { %1501 = vmatpush1.bf16.msra.mxu1 %v2207_v59 }
 0x33f   :  { %1502 = vmatprep.subr.bf16.mxu1 %v2212_v60 }
 0x342   :  { %1503 = vmatpush1.bf16.msra.mxu1 %v2210_v61 }
 0x3d8   :  { %v996_v44 = vpop.f32.mrb[4].mxu1 }
 0x3d9   :  { %v997_v45 = vadd.f32 %v996_v44, %v795_v42  ;;  %v998_v46 = vpop.f32.mrb[5].mxu1 }
 0x3da   :  { %v999_v47 = vadd.f32 %v998_v46, %v799_v43  ;;  %v1000_v48 = vpop.f32.mrb[6].mxu1 }
 0x3db   :  { %v1001_v49 = vadd.f32 %v1000_v48, %v795_v42  ;;  %v1002_v50 = vpop.f32.mrb[7].mxu1  ;;  %v1005_v52 = vmax.f32 %v997_v45, 0.0 }
 0x3dc   :  { %v1003_v51 = vadd.f32 %v1002_v50, %v799_v43  ;;  %v1006_v54 = vmax.f32 %v999_v47, 0.0 }
 0x3dd   :  { %v1007_v53 = vmax.f32 %v1001_v49, 0.0 }
 0x3de   :  { %v1008_v55 = vmax.f32 %v1003_v51, 0.0 }
 0x3df   :  { %v1009_v56 = vpack.c.bf16 %v1007_v53, %v1005_v52 }
 0x3e0   :  { %v1010_v57 = vpack.c.bf16 %v1008_v55, %v1006_v54 }
 0x3e2   :  { %1249 = vmatprep.mubr.bf16.mxu0 %v1010_v57 }
 0x3e3   :  { %1250 = vmatmul.mubr.bf16.vlgmr.msra.gmra.mrb[8].mxu0 %v1009_v56 }
 0x3e4   :  { %1917 = vmatpush3.bf16.msra.mxu0 %v2214_v63 }
 0x3e5   :  { %1918 = vmatprep.subr.bf16.mxu0 %v2215_v0 }
 0x3e8   :  { %1919 = vmatpush3.bf16.msra.mxu0 %v2216_v1 }
 0x3e9   :  { %1920 = vmatprep.subr.bf16.mxu0 %v2217_v2 }
 0x3ec   :  { %1921 = vmatpush3.bf16.msra.mxu0 %v2218_v3 }
 0x3ed   :  { %1922 = vmatprep.subr.bf16.mxu0 %v2219_v4 }
 0x3f0   :  { %1923 = vmatpush3.bf16.msra.mxu0 %v2220_v5 }
 0x3f1   :  { %1924 = vmatprep.subr.bf16.mxu0 %v2221_v6 }
 0x3f4   :  { %1925 = vmatpush3.bf16.msra.mxu0 %v2222_v7 }
 0x3f5   :  { %1926 = vmatprep.subr.bf16.mxu0 %v2223_v8 }
 0x3f8   :  { %1927 = vmatpush3.bf16.msra.mxu0 %v2224_v28 }
 0x3f9   :  { %1928 = vmatprep.subr.bf16.mxu0 %v2225_v29 }
 0x3fc   :  { %1929 = vmatpush3.bf16.msra.mxu0 %v2226_v30 }
 0x3fd   :  { %1930 = vmatprep.subr.bf16.mxu0 %v2227_v31 }
 0x400   :  { %1931 = vmatpush3.bf16.msra.mxu0 %v2228_v32 }
 0x4b6   :  { %v1251_v12 = vpop.f32.mrb[8].mxu0 }
 0x4b7   :  { %v1252_v13 = vadd.f32 %v1251_v12, %v1050_v10  ;;  %v1253_v14 = vpop.f32.mrb[9].mxu0 }
 0x4b8   :  { %v1254_v15 = vadd.f32 %v1253_v14, %v1054_v11  ;;  %v1255_v17 = vpop.f32.mrb[10].mxu0 }
 0x4b9   :  { %v1256_v19 = vadd.f32 %v1255_v17, %v1050_v10  ;;  %v1257_v20 = vpop.f32.mrb[11].mxu0  ;;  %v1260_v22 = vmax.f32 %v1252_v13, 0.0 }
 0x4ba   :  { %v1258_v21 = vadd.f32 %v1257_v20, %v1054_v11  ;;  %v1261_v24 = vmax.f32 %v1254_v15, 0.0 }
 0x4bb   :  { %v1262_v23 = vmax.f32 %v1256_v19, 0.0 }
 0x4bc   :  { %v1263_v25 = vmax.f32 %v1258_v21, 0.0 }
 0x4bd   :  { %v1264_v26 = vpack.c.bf16 %v1262_v23, %v1260_v22 }
 0x4be   :  { %v1265_v27 = vpack.c.bf16 %v1263_v25, %v1261_v24 }
 0x4c0   :  { %1504 = vmatprep.mubr.bf16.mxu1 %v1265_v27 }
 0x4c1   :  { %1505 = vmatmul.mubr.bf16.vlgmr.msra.gmra.mrb[8].mxu1 %v1264_v26 }
 0x594   :  { %v1506_v36 = vpop.f32.mrb[8].mxu1 }
 0x595   :  { %v1507_v37 = vadd.f32 %v1506_v36, %v1305_v34  ;;  %v1508_v38 = vpop.f32.mrb[9].mxu1 }
 0x596   :  { %v1509_v39 = vadd.f32 %v1508_v38, %v1309_v35  ;;  %v1510_v40 = vpop.f32.mrb[10].mxu1 }
 0x597   :  { %v1511_v41 = vadd.f32 %v1510_v40, %v1305_v34  ;;  %v1512_v42 = vpop.f32.mrb[11].mxu1  ;;  %v1515_v44 = vmax.f32 %v1507_v37, 0.0 }
 0x598   :  { %v1513_v43 = vadd.f32 %v1512_v42, %v1309_v35  ;;  %v1516_v46 = vmax.f32 %v1509_v39, 0.0 }
 0x599   :  { %v1517_v45 = vmax.f32 %v1511_v41, 0.0 }
 0x59a   :  { %v1518_v47 = vmax.f32 %v1513_v43, 0.0 }
 0x59b   :  { %v1519_v48 = vpack.c.bf16 %v1517_v45, %v1515_v44 }
 0x59c   :  { %v1520_v49 = vpack.c.bf16 %v1518_v47, %v1516_v46 }
 0x59e   :  { %1688 = vmatprep.mubr.bf16.mxu0 %v1520_v49 }
 0x59f   :  { %1689 = vmatmul.mubr.bf16.vlgmr.msra.gmra.mrb[12].mxu0 %v1519_v48 }
 0x672   :  { %v1932_v50 = vpop.f32.mrb[12].mxu0 }
 0x673   :  { %v1933_v18 = vpop.f32.mrb[13].mxu0 }
 0x674   :  { %v1934_v51 = vadd.f32 %v1933_v18, %v1932_v50  ;;  %v1935_v52 = vpop.f32.mrb[14].mxu0 }
 0x675   :  { %v1936_v53 = vpop.f32.mrb[15].mxu0 }
 0x676   :  { %v1691_v54 = vadd.f32 %v1934_v51, %v1899_v16  ;;  %v1937_v55 = vadd.f32 %v1936_v53, %v1935_v52 }
 0x678   :  { %1697 = vst [vmem:[#allocation10] sm:$0xff] %v1691_v54  ;;  %v1694_v56 = vadd.f32 %v1937_v55, %v1899_v16 }
 0x67a   :  { %1698 = vst [vmem:[#allocation10 + $0x8] sm:$0xff] %v1694_v56 }
 0x67b   :  { %2328 = shalt.err (!%p2325_p8)
}
 0x67c   :  { %s2329_s21 = scalar_lea.hbm %s2523_s7, 256 }
 0x67d   :  { %p2330_p9 = scmp.ne.s32.totalorder %s2523_s7, %s2329_s21  ;;  %p2333_p10 = scmp.lt.u32.totalorder %s2329_s21, %s2523_s7 }
 0x67f   :  { %p2335_p11 = pnand %p2333_p10, %p2330_p9 }
 0x681   :  { %2338 = shalt.err (!%p2335_p11)
}
 0x682   :  { %1710 = dma.vmem_to_hbm [thread:$0]  %s1705_s16, 256, %s2523_s7, [#allocation4], %s2348_s11, %s2348_s11, %s2349_s12  }
 0x683   :  { %2345 = dma.done.wait [#allocation4], 256  }
 0x684   :  { %2346 = vsyncadd [#allocation4], 4294967040 }
 0x685   :  { %1714 = vsyncpa [#allocation3], 1 }
 0x686   :  { %1715 = vsyncpa [#allocation6], 1 }
 0x687   :  { %1716 = vsyncpa [#allocation9], 1 }
 0x688   :  { %1717 = vsyncpa [#allocation4], 1 }

// kernel: tpu_custom_call.1
= control target key start
LH: loop header
LB: loop body
LE: loop exit
PB: predicated region body
PF: predicated region fallthrough
CT: control target
= control target key end

     0   :  { %12 = vsyncpa [#allocation3], 0  ;;  %s2516_s0 = inlined_call_operand.hbm [shape: bf16[16,128], index: 0, kind: input, shape index: {}]   ;;  %s2517_s1 = inlined_call_operand.hbm [shape: bf16[128,256], index: 1, kind: input, shape index: {}]   ;;  %s2518_s2 = inlined_call_operand.vmem [shape: f32[1,256], index: 2, kind: input, shape index: {}]   ;;  %s2519_s3 = inlined_call_operand.hbm [shape: bf16[5,256,256], index: 3, kind: input, shape index: {}]   ;;  %s2520_s4 = inlined_call_operand.vmem [shape: f32[5,1,256], index: 4, kind: input, shape index: {}]   ;;  %s2521_s5 = inlined_call_operand.hbm [shape: bf16[256,128], index: 5, kind: input, shape index: {}]   ;;  %s2522_s6 = inlined_call_operand.vmem [shape: f32[1,128], index: 6, kind: input, shape index: {}]   ;;  %s2523_s7 = inlined_call_operand.hbm [shape: f32[16,128], index: 7, kind: output, shape index: {}]  }
   0x1   :  { %13 = vsyncpa [#allocation6], 0 }
   0x2   :  { %14 = vsyncpa [#allocation9], 0 }
   0x3   :  { %15 = vsyncpa [#allocation4], 0  ;;  %s2347_s24 = smov [#allocation5]   ;;  %s2229_s28 = scalar_lea.hbm %s2517_s1, 2048 }
   0x4   :  { %s33_s25 = sshll.u32 %s2347_s24, 4  ;;  %p2230_p0 = scmp.ne.s32.totalorder %s2517_s1, %s2229_s28  ;;  %s34_s25 = int_to_ptr.vmem [resolvable:$true] %s33_s25 }
   0x5   :  { %p2233_p1 = scmp.lt.u32.totalorder %s2229_s28, %s2517_s1 }
   0x7   :  { %p2235_p2 = pnand %p2233_p1, %p2230_p0 }
   0x9   :  { %2238 = shalt.err (!%p2235_p2)
}
   0xa   :  { %s2239_s10 = scalar_lea.vmem %s34_s25, 2048  ;;  %p2244_p4 = scmp.lt.s32.totalorder %s34_s25, %s34_s25 }
   0xb   :  { %p2240_p3 = scmp.ne.s32.totalorder %s34_s25, %s2239_s10  ;;  %p2245_p5 = scmp.lt.s32.totalorder %s2239_s10, %s2239_s10 }
   0xd   :  { %p2246_p6 = por %p2245_p5, %p2244_p4 }
   0xf   :  { %p2247_p7 = pnand %p2246_p6, %p2240_p3 }
  0x11   :  { %2250 = shalt.err (!%p2247_p7)
}
  0x12   :  { %s2348_s11 = smov 128   ;;  %s2349_s12 = smov 8  }
  0x13   :  { %39 = dma.hbm_to_vmem [thread:$0]  %s2517_s1, 2048, %s34_s25, [#allocation6], %s2348_s11, %s2348_s11, %s2349_s12  }
  0x14   :  { %s2350_s15 = smov [#allocation2]   ;;  %s2251_s19 = scalar_lea.hbm %s2516_s0, 128 }
  0x15   :  { %s21_s16 = sshll.u32 %s2350_s15, 4  ;;  %p2252_p8 = scmp.ne.s32.totalorder %s2516_s0, %s2251_s19  ;;  %s22_s16 = int_to_ptr.vmem [resolvable:$true] %s21_s16 }
  0x16   :  { %p2255_p9 = scmp.lt.u32.totalorder %s2251_s19, %s2516_s0 }
  0x18   :  { %p2257_p10 = pnand %p2255_p9, %p2252_p8 }
  0x1a   :  { %2260 = shalt.err (!%p2257_p10)
}
  0x1b   :  { %s2261_s24 = scalar_lea.vmem %s22_s16, 128  ;;  %p2266_p12 = scmp.lt.s32.totalorder %s22_s16, %s22_s16 }
  0x1c   :  { %p2262_p11 = scmp.ne.s32.totalorder %s22_s16, %s2261_s24  ;;  %p2267_p13 = scmp.lt.s32.totalorder %s2261_s24, %s2261_s24 }
  0x1e   :  { %p2268_p0 = por %p2267_p13, %p2266_p12 }
  0x20   :  { %p2269_p1 = pnand %p2268_p0, %p2262_p11 }
  0x22   :  { %2272 = shalt.err (!%p2269_p1)
}
  0x23   :  { %s2351_s1 = smov 64   ;;  %s2352_s25 = smov 4  }
  0x24   :  { %27 = dma.hbm_to_vmem [thread:$0]  %s2516_s0, 128, %s22_s16, [#allocation3], %s2351_s1, %s2351_s1, %s2352_s25  }
  0x25   :  { %s2353_s28 = smov [#allocation7]   ;;  %s2354_s30 = smov [#allocation8]  }
  0x26   :  { %s47_s29 = sshll.u32 %s2353_s28, 4  ;;  %s61_s8 = sshll.u32 %s2354_s30, 4  ;;  %s48_s29 = int_to_ptr.vmem [resolvable:$true] %s47_s29  ;;  %s2427_s8 = int_to_ptr.vmem [resolvable:$true] %s61_s8 }
  0x27   :  { %s2273_s13 = scalar_lea.hbm %s2519_s3, 20480 }
  0x28   :  { %p2274_p2 = scmp.ne.s32.totalorder %s2519_s3, %s2273_s13  ;;  %p2277_p3 = scmp.lt.u32.totalorder %s2273_s13, %s2519_s3 }
  0x2a   :  { %p2279_p4 = pnand %p2277_p3, %p2274_p2 }
  0x2c   :  { %2282 = shalt.err (!%p2279_p4)
}
  0x2d   :  { %s2283_s0 = scalar_lea.vmem %s48_s29, 20480  ;;  %p2288_p6 = scmp.lt.s32.totalorder %s48_s29, %s48_s29 }
  0x2e   :  { %p2284_p5 = scmp.ne.s32.totalorder %s48_s29, %s2283_s0  ;;  %p2289_p7 = scmp.lt.s32.totalorder %s2283_s0, %s2283_s0 }
  0x30   :  { %p2290_p8 = por %p2289_p7, %p2288_p6 }
  0x32   :  { %p2291_p9 = pnand %p2290_p8, %p2284_p5 }
  0x34   :  { %2294 = shalt.err (!%p2291_p9)
}
  0x35   :  { %53 = dma.hbm_to_vmem [thread:$0]  %s2519_s3, 20480, %s48_s29, [#allocation6], %s2348_s11, %s2348_s11, %s2349_s12  }
  0x36   :  { %s2295_s22 = scalar_lea.hbm %s2521_s5, 2048 }
  0x37   :  { %p2296_p10 = scmp.ne.s32.totalorder %s2521_s5, %s2295_s22  ;;  %p2299_p11 = scmp.lt.u32.totalorder %s2295_s22, %s2521_s5 }
  0x39   :  { %p2301_p12 = pnand %p2299_p11, %p2296_p10 }
  0x3b   :  { %2304 = shalt.err (!%p2301_p12)
}
  0x3c   :  { %s2305_s28 = scalar_lea.vmem %s2427_s8, 2048  ;;  %p2310_p0 = scmp.lt.s32.totalorder %s2427_s8, %s2427_s8 }
  0x3d   :  { %p2306_p13 = scmp.ne.s32.totalorder %s2427_s8, %s2305_s28  ;;  %p2311_p1 = scmp.lt.s32.totalorder %s2305_s28, %s2305_s28 }
  0x3f   :  { %p2312_p2 = por %p2311_p1, %p2310_p0 }
  0x41   :  { %p2313_p3 = pnand %p2312_p2, %p2306_p13 }
  0x43   :  { %2316 = shalt.err (!%p2313_p3)
}
  0x44   :  { %67 = dma.hbm_to_vmem [thread:$0]  %s2521_s5, 2048, %s2427_s8, [#allocation9], %s2351_s1, %s2351_s1, %s2352_s25  }
  0x45   :  { %2339 = dma.done.wait [#allocation3], 128  }
  0x46   :  { %2340 = vsyncadd [#allocation3], 4294967168 }
  0x47   :  { %2341 = dma.done.wait [#allocation6], 22528  }
  0x48   :  { %2342 = vsyncadd [#allocation6], 4294944768 }
  0x49   :  { %2343 = dma.done.wait [#allocation9], 2048  }
  0x4a   :  { %2344 = vsyncadd [#allocation9], 4294965248  ;;  %v2355_v0 = vmov 0   ;;  %v1948_v1 = vld [vmem:[#allocation5 + $0x4] ss:$8 sps:$4 sm:$0xff]   ;;  %v1972_v27 = vld [vmem:[#allocation2] sm:$0xff]  }
  0x4b   :  { %231 = vmatprep.mubr.bf16.mxu0 %v2355_v0  ;;  %v1950_v2 = vld [vmem:[#allocation5] ss:$8 sps:$4 sm:$0xff]   ;;  %199 = vmatprep.subr.bf16.mxu0 %v1948_v1  ;;  %v1951_v3 = vld [vmem:[#allocation5 + $0x14] ss:$8 sps:$4 sm:$0xff]   ;;  %v1953_v4 = vld [vmem:[#allocation5 + $0x10] ss:$8 sps:$4 sm:$0xff]  }
  0x4c   :  { %200 = vmatpush1.bf16.msra.mxu0 %v1950_v2  ;;  %v1954_v5 = vld [vmem:[#allocation5 + $0x24] ss:$8 sps:$4 sm:$0xff]   ;;  %v1956_v6 = vld [vmem:[#allocation5 + $0x20] ss:$8 sps:$4 sm:$0xff]   ;;  %v1957_v7 = vld [vmem:[#allocation5 + $0x34] ss:$8 sps:$4 sm:$0xff]  }
  0x4d   :  { %201 = vmatprep.subr.bf16.mxu0 %v1951_v3  ;;  %v1959_v8 = vld [vmem:[#allocation5 + $0x30] ss:$8 sps:$4 sm:$0xff]   ;;  %v1960_v9 = vld [vmem:[#allocation5 + $0x44] ss:$8 sps:$4 sm:$0xff]   ;;  %v1975_v11 = vld [vmem:[#allocation7] ss:$8 sps:$4 sm:$0xff]  }
  0x4e   :  { %v1973_v10 = vld [vmem:[#allocation7 + $0x4] ss:$8 sps:$4 sm:$0xff]   ;;  %v1976_v12 = vld [vmem:[#allocation7 + $0x14] ss:$8 sps:$4 sm:$0xff]   ;;  %v1962_v13 = vld [vmem:[#allocation5 + $0x40] ss:$8 sps:$4 sm:$0xff]  }
  0x4f   :  { %452 = vmatprep.subr.bf16.mxu1 %v1973_v10  ;;  %v1978_v14 = vld [vmem:[#allocation7 + $0x10] ss:$8 sps:$4 sm:$0xff]   ;;  %v1963_v15 = vld [vmem:[#allocation5 + $0x54] ss:$8 sps:$4 sm:$0xff]   ;;  %v1979_v16 = vld [vmem:[#allocation7 + $0x24] ss:$8 sps:$4 sm:$0xff]  }
  0x50   :  { %202 = vmatpush1.bf16.msra.mxu0 %v1953_v4  ;;  %453 = vmatpush1.bf16.msra.mxu1 %v1975_v11  ;;  %v1965_v17 = vld [vmem:[#allocation5 + $0x50] ss:$8 sps:$4 sm:$0xff]   ;;  %v1981_v18 = vld [vmem:[#allocation7 + $0x20] ss:$8 sps:$4 sm:$0xff]   ;;  %v1966_v19 = vld [vmem:[#allocation5 + $0x64] ss:$8 sps:$4 sm:$0xff]  }
  0x51   :  { %203 = vmatprep.subr.bf16.mxu0 %v1954_v5  ;;  %454 = vmatprep.subr.bf16.mxu1 %v1976_v12  ;;  %v1982_v20 = vld [vmem:[#allocation7 + $0x34] ss:$8 sps:$4 sm:$0xff]   ;;  %v1968_v21 = vld [vmem:[#allocation5 + $0x60] ss:$8 sps:$4 sm:$0xff]   ;;  %v1984_v22 = vld [vmem:[#allocation7 + $0x30] ss:$8 sps:$4 sm:$0xff]  }
  0x52   :  { %v1969_v23 = vld [vmem:[#allocation5 + $0x74] ss:$8 sps:$4 sm:$0xff]   ;;  %v1985_v24 = vld [vmem:[#allocation7 + $0x44] ss:$8 sps:$4 sm:$0xff]   ;;  %v1971_v25 = vld [vmem:[#allocation5 + $0x70] ss:$8 sps:$4 sm:$0xff]  }
  0x53   :  { %v1987_v26 = vld [vmem:[#allocation7 + $0x40] ss:$8 sps:$4 sm:$0xff]   ;;  %v1988_v28 = vld [vmem:[#allocation7 + $0x54] ss:$8 sps:$4 sm:$0xff]   ;;  %v1990_v29 = vld [vmem:[#allocation7 + $0x50] ss:$8 sps:$4 sm:$0xff]  }
  0x54   :  { %204 = vmatpush1.bf16.msra.mxu0 %v1956_v6  ;;  %455 = vmatpush1.bf16.msra.mxu1 %v1978_v14  ;;  %v1991_v30 = vld [vmem:[#allocation7 + $0x64] ss:$8 sps:$4 sm:$0xff]   ;;  %v1993_v31 = vld [vmem:[#allocation7 + $0x60] ss:$8 sps:$4 sm:$0xff]   ;;  %v1994_v32 = vld [vmem:[#allocation7 + $0x74] ss:$8 sps:$4 sm:$0xff]   ;;  %v103_v14 = vlaneseq }
  0x55   :  { %205 = vmatprep.subr.bf16.mxu0 %v1957_v7  ;;  %456 = vmatprep.subr.bf16.mxu1 %v1979_v16  ;;  %v1996_v33 = vld [vmem:[#allocation7 + $0x70] ss:$8 sps:$4 sm:$0xff]   ;;  %v1997_v34 = vld [vmem:[#allocation7 + $0x84] ss:$8 sps:$4 sm:$0xff]   ;;  %v1999_v35 = vld [vmem:[#allocation7 + $0x80] ss:$8 sps:$4 sm:$0xff]  }
  0x56   :  { %v2000_v36 = vld [vmem:[#allocation7 + $0x94] ss:$8 sps:$4 sm:$0xff]   ;;  %v2002_v37 = vld [vmem:[#allocation7 + $0x90] ss:$8 sps:$4 sm:$0xff]   ;;  %v2003_v38 = vld [vmem:[#allocation7 + $0xa4] ss:$8 sps:$4 sm:$0xff]  }
  0x57   :  { %v2005_v39 = vld [vmem:[#allocation7 + $0xa0] ss:$8 sps:$4 sm:$0xff]   ;;  %v2006_v40 = vld [vmem:[#allocation7 + $0xb4] ss:$8 sps:$4 sm:$0xff]   ;;  %v2008_v41 = vld [vmem:[#allocation7 + $0xb0] ss:$8 sps:$4 sm:$0xff]  }
  0x58   :  { %206 = vmatpush1.bf16.msra.mxu0 %v1959_v8  ;;  %457 = vmatpush1.bf16.msra.mxu1 %v1981_v18  ;;  %v2009_v42 = vld [vmem:[#allocation7 + $0xc4] ss:$8 sps:$4 sm:$0xff]   ;;  %v2011_v43 = vld [vmem:[#allocation7 + $0xc0] ss:$8 sps:$4 sm:$0xff]   ;;  %v2012_v44 = vld [vmem:[#allocation7 + $0xd4] ss:$8 sps:$4 sm:$0xff]  }
  0x59   :  { %207 = vmatprep.subr.bf16.mxu0 %v1960_v9  ;;  %458 = vmatprep.subr.bf16.mxu1 %v1982_v20  ;;  %v2014_v45 = vld [vmem:[#allocation7 + $0xd0] ss:$8 sps:$4 sm:$0xff]   ;;  %v2015_v46 = vld [vmem:[#allocation7 + $0xe4] ss:$8 sps:$4 sm:$0xff]   ;;  %v2017_v47 = vld [vmem:[#allocation7 + $0xe0] ss:$8 sps:$4 sm:$0xff]  }
  0x5a   :  { %v2018_v48 = vld [vmem:[#allocation7 + $0xf4] ss:$8 sps:$4 sm:$0xff]   ;;  %v2020_v49 = vld [vmem:[#allocation7 + $0xf0] ss:$8 sps:$4 sm:$0xff]   ;;  %v2021_v50 = vld [vmem:[#allocation7 + $0x100] ss:$8 sps:$4 sm:$0xff]  }
  0x5b   :  { %v2023_v51 = vld [vmem:[#allocation7 + $0x104] ss:$8 sps:$4 sm:$0xff]   ;;  %v2026_v52 = vld [vmem:[#allocation7 + $0x114] ss:$8 sps:$4 sm:$0xff]   ;;  %v2024_v53 = vld [vmem:[#allocation7 + $0x110] ss:$8 sps:$4 sm:$0xff]  }
  0x5c   :  { %208 = vmatpush1.bf16.msra.mxu0 %v1962_v13  ;;  %459 = vmatpush1.bf16.msra.mxu1 %v1984_v22  ;;  %v2029_v54 = vld [vmem:[#allocation7 + $0x124] ss:$8 sps:$4 sm:$0xff]   ;;  %v2027_v55 = vld [vmem:[#allocation7 + $0x120] ss:$8 sps:$4 sm:$0xff]   ;;  %v2032_v56 = vld [vmem:[#allocation7 + $0x134] ss:$8 sps:$4 sm:$0xff]  }
  0x5d   :  { %209 = vmatprep.subr.bf16.mxu0 %v1963_v15  ;;  %460 = vmatprep.subr.bf16.mxu1 %v1985_v24  ;;  %v2030_v57 = vld [vmem:[#allocation7 + $0x130] ss:$8 sps:$4 sm:$0xff]   ;;  %v2035_v58 = vld [vmem:[#allocation7 + $0x144] ss:$8 sps:$4 sm:$0xff]   ;;  %v2033_v59 = vld [vmem:[#allocation7 + $0x140] ss:$8 sps:$4 sm:$0xff]  }
  0x5e   :  { %v2038_v60 = vld [vmem:[#allocation7 + $0x154] ss:$8 sps:$4 sm:$0xff]   ;;  %v2036_v61 = vld [vmem:[#allocation7 + $0x150] ss:$8 sps:$4 sm:$0xff]   ;;  %v2041_v62 = vld [vmem:[#allocation7 + $0x164] ss:$8 sps:$4 sm:$0xff]  }
  0x5f   :  { %v2039_v63 = vld [vmem:[#allocation7 + $0x160] ss:$8 sps:$4 sm:$0xff]   ;;  %v2044_v0 = vld [vmem:[#allocation7 + $0x174] ss:$8 sps:$4 sm:$0xff]   ;;  %v2042_v1 = vld [vmem:[#allocation7 + $0x170] ss:$8 sps:$4 sm:$0xff]  }
  0x60   :  { %210 = vmatpush1.bf16.msra.mxu0 %v1965_v17  ;;  %461 = vmatpush1.bf16.msra.mxu1 %v1987_v26  ;;  %v2047_v2 = vld [vmem:[#allocation7 + $0x184] ss:$8 sps:$4 sm:$0xff]   ;;  %v2045_v3 = vld [vmem:[#allocation7 + $0x180] ss:$8 sps:$4 sm:$0xff]   ;;  %v2050_v4 = vld [vmem:[#allocation7 + $0x194] ss:$8 sps:$4 sm:$0xff]  }
  0x61   :  { %211 = vmatprep.subr.bf16.mxu0 %v1966_v19  ;;  %462 = vmatprep.subr.bf16.mxu1 %v1988_v28  ;;  %v2048_v5 = vld [vmem:[#allocation7 + $0x190] ss:$8 sps:$4 sm:$0xff]   ;;  %v2053_v6 = vld [vmem:[#allocation7 + $0x1a4] ss:$8 sps:$4 sm:$0xff]   ;;  %v2051_v7 = vld [vmem:[#allocation7 + $0x1a0] ss:$8 sps:$4 sm:$0xff]  }
  0x62   :  { %v2056_v8 = vld [vmem:[#allocation7 + $0x1b4] ss:$8 sps:$4 sm:$0xff]   ;;  %v2054_v9 = vld [vmem:[#allocation7 + $0x1b0] ss:$8 sps:$4 sm:$0xff]   ;;  %v2059_v10 = vld [vmem:[#allocation7 + $0x1c4] ss:$8 sps:$4 sm:$0xff]  }
  0x63   :  { %v2057_v11 = vld [vmem:[#allocation7 + $0x1c0] ss:$8 sps:$4 sm:$0xff]   ;;  %v2062_v12 = vld [vmem:[#allocation7 + $0x1d4] ss:$8 sps:$4 sm:$0xff]   ;;  %v2060_v13 = vld [vmem:[#allocation7 + $0x1d0] ss:$8 sps:$4 sm:$0xff]  }
  0x64   :  { %212 = vmatpush1.bf16.msra.mxu0 %v1968_v21  ;;  %463 = vmatpush1.bf16.msra.mxu1 %v1990_v29  ;;  %v104_v15 = vshrl.u32 %v103_v14, 7  ;;  %v101_v17 = vld [vmem:[%s2518_s2] sm:$0x3]  ;;  %s2356_s0 = smov [#allocation10]  }
  0x65   :  { %213 = vmatprep.subr.bf16.mxu0 %v1969_v23  ;;  %464 = vmatprep.subr.bf16.mxu1 %v1991_v30  ;;  %s1704_s16 = sshll.u32 %s2356_s0, 4  ;;  %s1705_s16 = int_to_ptr.vmem [resolvable:$true] %s1704_s16 }
  0x66   :  { %v2464_v16 = vsub.s32 0, %v104_v15  ;;  %v2469_v18 = vsub.s32 1, %v104_v15  ;;  %s2317_s19 = scalar_lea.vmem %s1705_s16, 256  ;;  %p2322_p5 = scmp.lt.s32.totalorder %s1705_s16, %s1705_s16 }
  0x67   :  { %p2318_p4 = scmp.ne.s32.totalorder %s1705_s16, %s2317_s19  ;;  %p2323_p6 = scmp.lt.s32.totalorder %s2317_s19, %s2317_s19 }
  0x68   :  { %214 = vmatpush1.bf16.msra.mxu0 %v1971_v25  ;;  %465 = vmatpush1.bf16.msra.mxu1 %v1993_v31  ;;  %v106_v19 = vrot.slane %v101_v17, %v2464_v16  ;;  %v110_v20 = vrot.slane %v101_v17, %v2469_v18 }
  0x69   :  { %466 = vmatprep.subr.bf16.mxu1 %v1994_v32  ;;  %707 = vmatprep.subr.bf16.mxu0 %v2023_v51  ;;  %v2089_v51 = vld [vmem:[#allocation7 + $0x264] ss:$8 sps:$4 sm:$0xff]   ;;  %p2324_p7 = por %p2323_p6, %p2322_p5 }
  0x6b   :  { %232 = vmatmul.mubr.bf16.vlgmr.msra.gmra.mrb[0].mxu0 %v1972_v27  ;;  %p2325_p8 = pnand %p2324_p7, %p2318_p4 }
  0x6c   :  { %467 = vmatpush1.bf16.msra.mxu1 %v1996_v33  ;;  %708 = vmatpush1.bf16.msra.mxu0 %v2021_v50  ;;  %v2084_v50 = vld [vmem:[#allocation7 + $0x250] ss:$8 sps:$4 sm:$0xff]  }
  0x6d   :  { %468 = vmatprep.subr.bf16.mxu1 %v1997_v34  ;;  %709 = vmatprep.subr.bf16.mxu0 %v2026_v52  ;;  %v2087_v52 = vld [vmem:[#allocation7 + $0x260] ss:$8 sps:$4 sm:$0xff]  }
  0x70   :  { %469 = vmatpush1.bf16.msra.mxu1 %v1999_v35  ;;  %710 = vmatpush1.bf16.msra.mxu0 %v2024_v53  ;;  %v2065_v35 = vld [vmem:[#allocation7 + $0x1e4] ss:$8 sps:$4 sm:$0xff]   ;;  %v2092_v53 = vld [vmem:[#allocation7 + $0x274] ss:$8 sps:$4 sm:$0xff]  }
  0x71   :  { %470 = vmatprep.subr.bf16.mxu1 %v2000_v36  ;;  %711 = vmatprep.subr.bf16.mxu0 %v2029_v54  ;;  %v2063_v36 = vld [vmem:[#allocation7 + $0x1e0] ss:$8 sps:$4 sm:$0xff]   ;;  %v2090_v54 = vld [vmem:[#allocation7 + $0x270] ss:$8 sps:$4 sm:$0xff]  }
  0x74   :  { %471 = vmatpush1.bf16.msra.mxu1 %v2002_v37  ;;  %712 = vmatpush1.bf16.msra.mxu0 %v2027_v55  ;;  %v2068_v37 = vld [vmem:[#allocation7 + $0x1f4] ss:$8 sps:$4 sm:$0xff]   ;;  %v2095_v55 = vld [vmem:[#allocation7 + $0x284] ss:$8 sps:$4 sm:$0xff]  }
  0x75   :  { %472 = vmatprep.subr.bf16.mxu1 %v2003_v38  ;;  %713 = vmatprep.subr.bf16.mxu0 %v2032_v56  ;;  %v2066_v38 = vld [vmem:[#allocation7 + $0x1f0] ss:$8 sps:$4 sm:$0xff]   ;;  %v2093_v56 = vld [vmem:[#allocation7 + $0x280] ss:$8 sps:$4 sm:$0xff]  }
  0x78   :  { %473 = vmatpush1.bf16.msra.mxu1 %v2005_v39  ;;  %714 = vmatpush1.bf16.msra.mxu0 %v2030_v57  ;;  %v2069_v39 = vld [vmem:[#allocation7 + $0x200] ss:$8 sps:$4 sm:$0xff]   ;;  %v2098_v57 = vld [vmem:[#allocation7 + $0x294] ss:$8 sps:$4 sm:$0xff]  }
  0x79   :  { %474 = vmatprep.subr.bf16.mxu1 %v2006_v40  ;;  %715 = vmatprep.subr.bf16.mxu0 %v2035_v58  ;;  %v2071_v40 = vld [vmem:[#allocation7 + $0x204] ss:$8 sps:$4 sm:$0xff]   ;;  %v2096_v58 = vld [vmem:[#allocation7 + $0x290] ss:$8 sps:$4 sm:$0xff]  }
  0x7c   :  { %475 = vmatpush1.bf16.msra.mxu1 %v2008_v41  ;;  %716 = vmatpush1.bf16.msra.mxu0 %v2033_v59  ;;  %v2074_v41 = vld [vmem:[#allocation7 + $0x214] ss:$8 sps:$4 sm:$0xff]   ;;  %v2101_v59 = vld [vmem:[#allocation7 + $0x2a4] ss:$8 sps:$4 sm:$0xff]  }
  0x7d   :  { %476 = vmatprep.subr.bf16.mxu1 %v2009_v42  ;;  %717 = vmatprep.subr.bf16.mxu0 %v2038_v60  ;;  %v2072_v42 = vld [vmem:[#allocation7 + $0x210] ss:$8 sps:$4 sm:$0xff]   ;;  %v2099_v60 = vld [vmem:[#allocation7 + $0x2a0] ss:$8 sps:$4 sm:$0xff]  }
  0x80   :  { %477 = vmatpush1.bf16.msra.mxu1 %v2011_v43  ;;  %718 = vmatpush1.bf16.msra.mxu0 %v2036_v61  ;;  %v2077_v43 = vld [vmem:[#allocation7 + $0x224] ss:$8 sps:$4 sm:$0xff]   ;;  %v2104_v61 = vld [vmem:[#allocation7 + $0x2b4] ss:$8 sps:$4 sm:$0xff]  }
  0x81   :  { %478 = vmatprep.subr.bf16.mxu1 %v2012_v44  ;;  %719 = vmatprep.subr.bf16.mxu0 %v2041_v62  ;;  %v2075_v44 = vld [vmem:[#allocation7 + $0x220] ss:$8 sps:$4 sm:$0xff]   ;;  %v2102_v62 = vld [vmem:[#allocation7 + $0x2b0] ss:$8 sps:$4 sm:$0xff]  }
  0x84   :  { %479 = vmatpush1.bf16.msra.mxu1 %v2014_v45  ;;  %720 = vmatpush1.bf16.msra.mxu0 %v2039_v63  ;;  %v2080_v45 = vld [vmem:[#allocation7 + $0x234] ss:$8 sps:$4 sm:$0xff]   ;;  %v2107_v63 = vld [vmem:[#allocation7 + $0x2c4] ss:$8 sps:$4 sm:$0xff]  }
  0x85   :  { %480 = vmatprep.subr.bf16.mxu1 %v2015_v46  ;;  %721 = vmatprep.subr.bf16.mxu0 %v2044_v0  ;;  %v2078_v46 = vld [vmem:[#allocation7 + $0x230] ss:$8 sps:$4 sm:$0xff]   ;;  %v2105_v0 = vld [vmem:[#allocation7 + $0x2c0] ss:$8 sps:$4 sm:$0xff]  }
  0x88   :  { %481 = vmatpush1.bf16.msra.mxu1 %v2017_v47  ;;  %722 = vmatpush1.bf16.msra.mxu0 %v2042_v1  ;;  %v2083_v47 = vld [vmem:[#allocation7 + $0x244] ss:$8 sps:$4 sm:$0xff]   ;;  %v2110_v1 = vld [vmem:[#allocation7 + $0x2d4] ss:$8 sps:$4 sm:$0xff]  }
  0x89   :  { %482 = vmatprep.subr.bf16.mxu1 %v2018_v48  ;;  %723 = vmatprep.subr.bf16.mxu0 %v2047_v2  ;;  %v2081_v48 = vld [vmem:[#allocation7 + $0x240] ss:$8 sps:$4 sm:$0xff]   ;;  %v2108_v2 = vld [vmem:[#allocation7 + $0x2d0] ss:$8 sps:$4 sm:$0xff]  }
  0x8c   :  { %483 = vmatpush1.bf16.msra.mxu1 %v2020_v49  ;;  %724 = vmatpush1.bf16.msra.mxu0 %v2045_v3  ;;  %v2086_v49 = vld [vmem:[#allocation7 + $0x254] ss:$8 sps:$4 sm:$0xff]   ;;  %v280_v3 = vld [vmem:[%s2520_s4] sm:$0x3] }
  0x8d   :  { %725 = vmatprep.subr.bf16.mxu0 %v2050_v4  ;;  %962 = vmatprep.subr.bf16.mxu1 %v2071_v40  ;;  %v285_v4 = vrot.slane %v280_v3, %v2464_v16  ;;  %v2140_v40 = vld [vmem:[#allocation7 + $0x374] ss:$8 sps:$4 sm:$0xff]  }
  0x90   :  { %726 = vmatpush1.bf16.msra.mxu0 %v2048_v5  ;;  %v289_v5 = vrot.slane %v280_v3, %v2469_v18 }
  0x91   :  { %727 = vmatprep.subr.bf16.mxu0 %v2053_v6 }
  0x94   :  { %728 = vmatpush1.bf16.msra.mxu0 %v2051_v7 }
  0x95   :  { %729 = vmatprep.subr.bf16.mxu0 %v2056_v8 }
  0x98   :  { %730 = vmatpush1.bf16.msra.mxu0 %v2054_v9 }
  0x99   :  { %731 = vmatprep.subr.bf16.mxu0 %v2059_v10 }
  0x9c   :  { %732 = vmatpush1.bf16.msra.mxu0 %v2057_v11 }
  0x9d   :  { %733 = vmatprep.subr.bf16.mxu0 %v2062_v12 }
  0xa0   :  { %734 = vmatpush1.bf16.msra.mxu0 %v2060_v13 }
  0xa1   :  { %735 = vmatprep.subr.bf16.mxu0 %v2065_v35  ;;  %v2129_v35 = vld [vmem:[#allocation7 + $0x340] ss:$8 sps:$4 sm:$0xff]  }
  0xa4   :  { %736 = vmatpush1.bf16.msra.mxu0 %v2063_v36  ;;  %v2134_v36 = vld [vmem:[#allocation7 + $0x354] ss:$8 sps:$4 sm:$0xff]  }
  0xa5   :  { %737 = vmatprep.subr.bf16.mxu0 %v2068_v37  ;;  %v2132_v37 = vld [vmem:[#allocation7 + $0x350] ss:$8 sps:$4 sm:$0xff]  }
  0xa8   :  { %738 = vmatpush1.bf16.msra.mxu0 %v2066_v38  ;;  %v2137_v38 = vld [vmem:[#allocation7 + $0x364] ss:$8 sps:$4 sm:$0xff]  }
 0x13e   :  { %v233_v21 = vpop.f32.mrb[0].mxu0 }
 0x13f   :  { %v234_v22 = vadd.f32 %v233_v21, %v106_v19  ;;  %v235_v23 = vpop.f32.mrb[1].mxu0 }
 0x140   :  { %v236_v24 = vadd.f32 %v235_v23, %v110_v20  ;;  %v237_v25 = vpop.f32.mrb[2].mxu0  ;;  %v2111_v23 = vld [vmem:[#allocation7 + $0x2e0] ss:$8 sps:$4 sm:$0xff]  }
 0x141   :  { %v238_v26 = vadd.f32 %v237_v25, %v106_v19  ;;  %v239_v27 = vpop.f32.mrb[3].mxu0  ;;  %v242_v29 = vmax.f32 %v234_v22, 0.0  ;;  %v2113_v22 = vld [vmem:[#allocation7 + $0x2e4] ss:$8 sps:$4 sm:$0xff]   ;;  %v2114_v25 = vld [vmem:[#allocation7 + $0x2f0] ss:$8 sps:$4 sm:$0xff]  }
 0x142   :  { %v240_v28 = vadd.f32 %v239_v27, %v110_v20  ;;  %v243_v31 = vmax.f32 %v236_v24, 0.0  ;;  %v2116_v24 = vld [vmem:[#allocation7 + $0x2f4] ss:$8 sps:$4 sm:$0xff]   ;;  %v2119_v27 = vld [vmem:[#allocation7 + $0x304] ss:$8 sps:$4 sm:$0xff]  }
 0x143   :  { %v244_v30 = vmax.f32 %v238_v26, 0.0  ;;  %v2117_v26 = vld [vmem:[#allocation7 + $0x300] ss:$8 sps:$4 sm:$0xff]   ;;  %1217 = vmatprep.subr.bf16.mxu0 %v2119_v27  ;;  %v2188_v27 = vld [vmem:[#allocation7 + $0x474] ss:$8 sps:$4 sm:$0xff]  }
 0x144   :  { %v245_v32 = vmax.f32 %v240_v28, 0.0  ;;  %v2122_v28 = vld [vmem:[#allocation7 + $0x314] ss:$8 sps:$4 sm:$0xff]  }
 0x145   :  { %v246_v33 = vpack.c.bf16 %v244_v30, %v242_v29  ;;  %v2120_v29 = vld [vmem:[#allocation7 + $0x310] ss:$8 sps:$4 sm:$0xff]   ;;  %v2125_v30 = vld [vmem:[#allocation7 + $0x324] ss:$8 sps:$4 sm:$0xff]  }
 0x146   :  { %v247_v34 = vpack.c.bf16 %v245_v32, %v243_v31  ;;  %v2123_v31 = vld [vmem:[#allocation7 + $0x320] ss:$8 sps:$4 sm:$0xff]   ;;  %v2128_v32 = vld [vmem:[#allocation7 + $0x334] ss:$8 sps:$4 sm:$0xff]  }
 0x148   :  { %484 = vmatprep.mubr.bf16.mxu1 %v247_v34  ;;  %v2131_v34 = vld [vmem:[#allocation7 + $0x344] ss:$8 sps:$4 sm:$0xff]  }
 0x149   :  { %485 = vmatmul.mubr.bf16.vlgmr.msra.gmra.mrb[0].mxu1 %v246_v33  ;;  %v2126_v33 = vld [vmem:[#allocation7 + $0x330] ss:$8 sps:$4 sm:$0xff]  }
 0x14a   :  { %963 = vmatpush1.bf16.msra.mxu1 %v2069_v39  ;;  %v2135_v39 = vld [vmem:[#allocation7 + $0x360] ss:$8 sps:$4 sm:$0xff]  }
 0x14b   :  { %964 = vmatprep.subr.bf16.mxu1 %v2074_v41  ;;  %v2138_v41 = vld [vmem:[#allocation7 + $0x370] ss:$8 sps:$4 sm:$0xff]  }
 0x14e   :  { %965 = vmatpush1.bf16.msra.mxu1 %v2072_v42  ;;  %v2143_v42 = vld [vmem:[#allocation7 + $0x384] ss:$8 sps:$4 sm:$0xff]  }
 0x14f   :  { %966 = vmatprep.subr.bf16.mxu1 %v2077_v43  ;;  %v2141_v43 = vld [vmem:[#allocation7 + $0x380] ss:$8 sps:$4 sm:$0xff]  }
 0x152   :  { %967 = vmatpush1.bf16.msra.mxu1 %v2075_v44  ;;  %v2146_v44 = vld [vmem:[#allocation7 + $0x394] ss:$8 sps:$4 sm:$0xff]  }
 0x153   :  { %968 = vmatprep.subr.bf16.mxu1 %v2080_v45  ;;  %v2144_v45 = vld [vmem:[#allocation7 + $0x390] ss:$8 sps:$4 sm:$0xff]  }
 0x156   :  { %969 = vmatpush1.bf16.msra.mxu1 %v2078_v46  ;;  %v2149_v46 = vld [vmem:[#allocation7 + $0x3a4] ss:$8 sps:$4 sm:$0xff]  }
 0x157   :  { %970 = vmatprep.subr.bf16.mxu1 %v2083_v47  ;;  %v2147_v47 = vld [vmem:[#allocation7 + $0x3a0] ss:$8 sps:$4 sm:$0xff]  }
 0x15a   :  { %971 = vmatpush1.bf16.msra.mxu1 %v2081_v48  ;;  %v2152_v48 = vld [vmem:[#allocation7 + $0x3b4] ss:$8 sps:$4 sm:$0xff]  }
 0x15b   :  { %972 = vmatprep.subr.bf16.mxu1 %v2086_v49  ;;  %v2150_v49 = vld [vmem:[#allocation7 + $0x3b0] ss:$8 sps:$4 sm:$0xff]  }
 0x15e   :  { %973 = vmatpush1.bf16.msra.mxu1 %v2084_v50  ;;  %v2155_v50 = vld [vmem:[#allocation7 + $0x3c4] ss:$8 sps:$4 sm:$0xff]  }
 0x15f   :  { %974 = vmatprep.subr.bf16.mxu1 %v2089_v51  ;;  %v2153_v51 = vld [vmem:[#allocation7 + $0x3c0] ss:$8 sps:$4 sm:$0xff]  }
 0x162   :  { %975 = vmatpush1.bf16.msra.mxu1 %v2087_v52  ;;  %v2158_v52 = vld [vmem:[#allocation7 + $0x3d4] ss:$8 sps:$4 sm:$0xff]  }
 0x163   :  { %976 = vmatprep.subr.bf16.mxu1 %v2092_v53  ;;  %v2156_v53 = vld [vmem:[#allocation7 + $0x3d0] ss:$8 sps:$4 sm:$0xff]  }
 0x166   :  { %977 = vmatpush1.bf16.msra.mxu1 %v2090_v54  ;;  %v1767_v54 = vld [vmem:[%s2520_s4 + $0x2] sm:$0x3] }
 0x167   :  { %978 = vmatprep.subr.bf16.mxu1 %v2095_v55  ;;  %v540_v55 = vrot.slane %v1767_v54, %v2464_v16 }
 0x16a   :  { %979 = vmatpush1.bf16.msra.mxu1 %v2093_v56  ;;  %v544_v56 = vrot.slane %v1767_v54, %v2469_v18 }
 0x16b   :  { %980 = vmatprep.subr.bf16.mxu1 %v2098_v57 }
 0x16e   :  { %981 = vmatpush1.bf16.msra.mxu1 %v2096_v58 }
 0x16f   :  { %982 = vmatprep.subr.bf16.mxu1 %v2101_v59 }
 0x172   :  { %983 = vmatpush1.bf16.msra.mxu1 %v2099_v60 }
 0x173   :  { %984 = vmatprep.subr.bf16.mxu1 %v2104_v61 }
 0x176   :  { %985 = vmatpush1.bf16.msra.mxu1 %v2102_v62 }
 0x177   :  { %986 = vmatprep.subr.bf16.mxu1 %v2107_v63 }
 0x17a   :  { %987 = vmatpush1.bf16.msra.mxu1 %v2105_v0 }
 0x17b   :  { %988 = vmatprep.subr.bf16.mxu1 %v2110_v1 }
 0x17e   :  { %989 = vmatpush1.bf16.msra.mxu1 %v2108_v2 }
 0x17f   :  { %990 = vmatprep.subr.bf16.mxu1 %v2113_v22  ;;  %v2177_v22 = vld [vmem:[#allocation7 + $0x440] ss:$8 sps:$4 sm:$0xff]  }
 0x182   :  { %991 = vmatpush1.bf16.msra.mxu1 %v2111_v23  ;;  %v2182_v23 = vld [vmem:[#allocation7 + $0x454] ss:$8 sps:$4 sm:$0xff]  }
 0x183   :  { %992 = vmatprep.subr.bf16.mxu1 %v2116_v24  ;;  %v2180_v24 = vld [vmem:[#allocation7 + $0x450] ss:$8 sps:$4 sm:$0xff]  }
 0x186   :  { %993 = vmatpush1.bf16.msra.mxu1 %v2114_v25  ;;  %v2185_v25 = vld [vmem:[#allocation7 + $0x464] ss:$8 sps:$4 sm:$0xff]  }
 0x21c   :  { %v486_v6 = vpop.f32.mrb[0].mxu1 }
 0x21d   :  { %v487_v7 = vadd.f32 %v486_v6, %v285_v4  ;;  %v488_v8 = vpop.f32.mrb[1].mxu1 }
 0x21e   :  { %v489_v9 = vadd.f32 %v488_v8, %v289_v5  ;;  %v490_v10 = vpop.f32.mrb[2].mxu1  ;;  %v2159_v8 = vld [vmem:[#allocation7 + $0x3e0] ss:$8 sps:$4 sm:$0xff]  }
 0x21f   :  { %v491_v11 = vadd.f32 %v490_v10, %v285_v4  ;;  %v492_v12 = vpop.f32.mrb[3].mxu1  ;;  %v495_v14 = vmax.f32 %v487_v7, 0.0  ;;  %v2161_v7 = vld [vmem:[#allocation7 + $0x3e4] ss:$8 sps:$4 sm:$0xff]   ;;  %v2162_v10 = vld [vmem:[#allocation7 + $0x3f0] ss:$8 sps:$4 sm:$0xff]  }
 0x220   :  { %v493_v13 = vadd.f32 %v492_v12, %v289_v5  ;;  %v496_v17 = vmax.f32 %v489_v9, 0.0  ;;  %v2164_v9 = vld [vmem:[#allocation7 + $0x3f4] ss:$8 sps:$4 sm:$0xff]   ;;  %v2167_v12 = vld [vmem:[#allocation7 + $0x404] ss:$8 sps:$4 sm:$0xff]  }
 0x221   :  { %v497_v15 = vmax.f32 %v491_v11, 0.0  ;;  %v2165_v11 = vld [vmem:[#allocation7 + $0x400] ss:$8 sps:$4 sm:$0xff]   ;;  %1472 = vmatprep.subr.bf16.mxu1 %v2167_v12 }
 0x222   :  { %v498_v19 = vmax.f32 %v493_v13, 0.0  ;;  %v2170_v13 = vld [vmem:[#allocation7 + $0x414] ss:$8 sps:$4 sm:$0xff]  }
 0x223   :  { %v499_v20 = vpack.c.bf16 %v497_v15, %v495_v14  ;;  %v2168_v14 = vld [vmem:[#allocation7 + $0x410] ss:$8 sps:$4 sm:$0xff]   ;;  %v2173_v15 = vld [vmem:[#allocation7 + $0x424] ss:$8 sps:$4 sm:$0xff]  }
 0x224   :  { %v500_v21 = vpack.c.bf16 %v498_v19, %v496_v17  ;;  %v2171_v17 = vld [vmem:[#allocation7 + $0x420] ss:$8 sps:$4 sm:$0xff]   ;;  %v2176_v19 = vld [vmem:[#allocation7 + $0x434] ss:$8 sps:$4 sm:$0xff]  }
 0x226   :  { %739 = vmatprep.mubr.bf16.mxu0 %v500_v21  ;;  %v2179_v21 = vld [vmem:[#allocation7 + $0x444] ss:$8 sps:$4 sm:$0xff]  }
 0x227   :  { %740 = vmatmul.mubr.bf16.vlgmr.msra.gmra.mrb[4].mxu0 %v499_v20  ;;  %v2174_v20 = vld [vmem:[#allocation7 + $0x430] ss:$8 sps:$4 sm:$0xff]  }
 0x228   :  { %1218 = vmatpush1.bf16.msra.mxu0 %v2117_v26  ;;  %v2183_v26 = vld [vmem:[#allocation7 + $0x460] ss:$8 sps:$4 sm:$0xff]  }
 0x229   :  { %1219 = vmatprep.subr.bf16.mxu0 %v2122_v28  ;;  %v2186_v28 = vld [vmem:[#allocation7 + $0x470] ss:$8 sps:$4 sm:$0xff]  }
 0x22c   :  { %1220 = vmatpush1.bf16.msra.mxu0 %v2120_v29  ;;  %v2191_v29 = vld [vmem:[#allocation7 + $0x484] ss:$8 sps:$4 sm:$0xff]  }
 0x22d   :  { %1221 = vmatprep.subr.bf16.mxu0 %v2125_v30  ;;  %v2189_v30 = vld [vmem:[#allocation7 + $0x480] ss:$8 sps:$4 sm:$0xff]  }
 0x230   :  { %1222 = vmatpush1.bf16.msra.mxu0 %v2123_v31  ;;  %v2194_v31 = vld [vmem:[#allocation7 + $0x494] ss:$8 sps:$4 sm:$0xff]  }
 0x231   :  { %1223 = vmatprep.subr.bf16.mxu0 %v2128_v32  ;;  %v2192_v32 = vld [vmem:[#allocation7 + $0x490] ss:$8 sps:$4 sm:$0xff]  }
 0x234   :  { %1224 = vmatpush1.bf16.msra.mxu0 %v2126_v33  ;;  %v2197_v33 = vld [vmem:[#allocation7 + $0x4a4] ss:$8 sps:$4 sm:$0xff]  }
 0x235   :  { %1225 = vmatprep.subr.bf16.mxu0 %v2131_v34  ;;  %v2195_v34 = vld [vmem:[#allocation7 + $0x4a0] ss:$8 sps:$4 sm:$0xff]  }
 0x238   :  { %1226 = vmatpush1.bf16.msra.mxu0 %v2129_v35  ;;  %v2200_v35 = vld [vmem:[#allocation7 + $0x4b4] ss:$8 sps:$4 sm:$0xff]  }
 0x239   :  { %1227 = vmatprep.subr.bf16.mxu0 %v2134_v36  ;;  %v2198_v36 = vld [vmem:[#allocation7 + $0x4b0] ss:$8 sps:$4 sm:$0xff]  }
 0x23c   :  { %1228 = vmatpush1.bf16.msra.mxu0 %v2132_v37  ;;  %v2203_v37 = vld [vmem:[#allocation7 + $0x4c4] ss:$8 sps:$4 sm:$0xff]  }
 0x23d   :  { %1229 = vmatprep.subr.bf16.mxu0 %v2137_v38  ;;  %v2201_v38 = vld [vmem:[#allocation7 + $0x4c0] ss:$8 sps:$4 sm:$0xff]  }
 0x240   :  { %1230 = vmatpush1.bf16.msra.mxu0 %v2135_v39  ;;  %v2206_v39 = vld [vmem:[#allocation7 + $0x4d4] ss:$8 sps:$4 sm:$0xff]  }
 0x241   :  { %1231 = vmatprep.subr.bf16.mxu0 %v2140_v40  ;;  %v2204_v40 = vld [vmem:[#allocation7 + $0x4d0] ss:$8 sps:$4 sm:$0xff]  }
 0x244   :  { %1232 = vmatpush1.bf16.msra.mxu0 %v2138_v41  ;;  %v1800_v41 = vld [vmem:[%s2520_s4 + $0x4] sm:$0x3] }
 0x245   :  { %1233 = vmatprep.subr.bf16.mxu0 %v2143_v42  ;;  %v795_v42 = vrot.slane %v1800_v41, %v2464_v16 }
 0x248   :  { %1234 = vmatpush1.bf16.msra.mxu0 %v2141_v43  ;;  %v799_v43 = vrot.slane %v1800_v41, %v2469_v18 }
 0x249   :  { %1235 = vmatprep.subr.bf16.mxu0 %v2146_v44 }
 0x24c   :  { %1236 = vmatpush1.bf16.msra.mxu0 %v2144_v45 }
 0x24d   :  { %1237 = vmatprep.subr.bf16.mxu0 %v2149_v46 }
 0x250   :  { %1238 = vmatpush1.bf16.msra.mxu0 %v2147_v47 }
 0x251   :  { %1239 = vmatprep.subr.bf16.mxu0 %v2152_v48 }
 0x254   :  { %1240 = vmatpush1.bf16.msra.mxu0 %v2150_v49 }
 0x255   :  { %1241 = vmatprep.subr.bf16.mxu0 %v2155_v50 }
 0x258   :  { %1242 = vmatpush1.bf16.msra.mxu0 %v2153_v51 }
 0x259   :  { %1243 = vmatprep.subr.bf16.mxu0 %v2158_v52 }
 0x25c   :  { %1244 = vmatpush1.bf16.msra.mxu0 %v2156_v53 }
 0x25d   :  { %1245 = vmatprep.subr.bf16.mxu0 %v2161_v7  ;;  %v2222_v7 = vld [vmem:[#allocation8 + $0x20] sm:$0xff]  }
 0x260   :  { %1246 = vmatpush1.bf16.msra.mxu0 %v2159_v8  ;;  %v2223_v8 = vld [vmem:[#allocation8 + $0x68] sm:$0xff]  }
 0x261   :  { %1247 = vmatprep.subr.bf16.mxu0 %v2164_v9  ;;  %v1833_v9 = vld [vmem:[%s2520_s4 + $0x6] sm:$0x3] }
 0x264   :  { %1248 = vmatpush1.bf16.msra.mxu0 %v2162_v10  ;;  %v1050_v10 = vrot.slane %v1833_v9, %v2464_v16 }
 0x2fa   :  { %v741_v57 = vpop.f32.mrb[4].mxu0 }
 0x2fb   :  { %v742_v58 = vadd.f32 %v741_v57, %v540_v55  ;;  %v743_v59 = vpop.f32.mrb[5].mxu0 }
 0x2fc   :  { %v744_v60 = vadd.f32 %v743_v59, %v544_v56  ;;  %v745_v61 = vpop.f32.mrb[6].mxu0  ;;  %v2207_v59 = vld [vmem:[#allocation7 + $0x4e0] ss:$8 sps:$4 sm:$0xff]  }
 0x2fd   :  { %v746_v62 = vadd.f32 %v745_v61, %v540_v55  ;;  %v747_v63 = vpop.f32.mrb[7].mxu0  ;;  %v750_v1 = vmax.f32 %v742_v58, 0.0  ;;  %v2209_v58 = vld [vmem:[#allocation7 + $0x4e4] ss:$8 sps:$4 sm:$0xff]   ;;  %v2210_v61 = vld [vmem:[#allocation7 + $0x4f0] ss:$8 sps:$4 sm:$0xff]  }
 0x2fe   :  { %v748_v0 = vadd.f32 %v747_v63, %v544_v56  ;;  %v751_v3 = vmax.f32 %v744_v60, 0.0  ;;  %v2212_v60 = vld [vmem:[#allocation7 + $0x4f4] ss:$8 sps:$4 sm:$0xff]   ;;  %v2214_v63 = vld [vmem:[#allocation8] sm:$0xff]  }
 0x2ff   :  { %v752_v2 = vmax.f32 %v746_v62, 0.0  ;;  %v2213_v62 = vld [vmem:[#allocation8 + $0x40] sm:$0xff]  }
 0x300   :  { %v753_v4 = vmax.f32 %v748_v0, 0.0  ;;  %v2215_v0 = vld [vmem:[#allocation8 + $0x48] sm:$0xff]   ;;  %1916 = vmatprep.subr.bf16.mxu0 %v2213_v62 }
 0x301   :  { %v754_v5 = vpack.c.bf16 %v752_v2, %v750_v1  ;;  %v2216_v1 = vld [vmem:[#allocation8 + $0x8] sm:$0xff]   ;;  %v2217_v2 = vld [vmem:[#allocation8 + $0x50] sm:$0xff]  }
 0x302   :  { %v755_v6 = vpack.c.bf16 %v753_v4, %v751_v3  ;;  %v2218_v3 = vld [vmem:[#allocation8 + $0x10] sm:$0xff]   ;;  %v2219_v4 = vld [vmem:[#allocation8 + $0x58] sm:$0xff]  }
 0x304   :  { %994 = vmatprep.mubr.bf16.mxu1 %v755_v6  ;;  %v2221_v6 = vld [vmem:[#allocation8 + $0x60] sm:$0xff]  }
 0x305   :  { %995 = vmatmul.mubr.bf16.vlgmr.msra.gmra.mrb[4].mxu1 %v754_v5  ;;  %v2220_v5 = vld [vmem:[#allocation8 + $0x18] sm:$0xff]  }
 0x306   :  { %1473 = vmatpush1.bf16.msra.mxu1 %v2165_v11  ;;  %v1054_v11 = vrot.slane %v1833_v9, %v2469_v18 }
 0x307   :  { %1474 = vmatprep.subr.bf16.mxu1 %v2170_v13 }
 0x30a   :  { %1475 = vmatpush1.bf16.msra.mxu1 %v2168_v14 }
 0x30b   :  { %1476 = vmatprep.subr.bf16.mxu1 %v2173_v15 }
 0x30e   :  { %1477 = vmatpush1.bf16.msra.mxu1 %v2171_v17 }
 0x30f   :  { %1478 = vmatprep.subr.bf16.mxu1 %v2176_v19 }
 0x312   :  { %1479 = vmatpush1.bf16.msra.mxu1 %v2174_v20 }
 0x313   :  { %1480 = vmatprep.subr.bf16.mxu1 %v2179_v21 }
 0x316   :  { %1481 = vmatpush1.bf16.msra.mxu1 %v2177_v22 }
 0x317   :  { %1482 = vmatprep.subr.bf16.mxu1 %v2182_v23 }
 0x31a   :  { %1483 = vmatpush1.bf16.msra.mxu1 %v2180_v24 }
 0x31b   :  { %1484 = vmatprep.subr.bf16.mxu1 %v2185_v25 }
 0x31e   :  { %1485 = vmatpush1.bf16.msra.mxu1 %v2183_v26 }
 0x31f   :  { %1486 = vmatprep.subr.bf16.mxu1 %v2188_v27 }
 0x322   :  { %1487 = vmatpush1.bf16.msra.mxu1 %v2186_v28  ;;  %v2224_v28 = vld [vmem:[#allocation8 + $0x28] sm:$0xff]  }
 0x323   :  { %1488 = vmatprep.subr.bf16.mxu1 %v2191_v29  ;;  %v2225_v29 = vld [vmem:[#allocation8 + $0x70] sm:$0xff]  }
 0x326   :  { %1489 = vmatpush1.bf16.msra.mxu1 %v2189_v30  ;;  %v2226_v30 = vld [vmem:[#allocation8 + $0x30] sm:$0xff]  }
 0x327   :  { %1490 = vmatprep.subr.bf16.mxu1 %v2194_v31  ;;  %v2227_v31 = vld [vmem:[#allocation8 + $0x78] sm:$0xff]  }
 0x32a   :  { %1491 = vmatpush1.bf16.msra.mxu1 %v2192_v32  ;;  %v2228_v32 = vld [vmem:[#allocation8 + $0x38] sm:$0xff]  }
 0x32b   :  { %1492 = vmatprep.subr.bf16.mxu1 %v2197_v33  ;;  %v1866_v33 = vld [vmem:[%s2520_s4 + $0x8] sm:$0x3] }
 0x32e   :  { %1493 = vmatpush1.bf16.msra.mxu1 %v2195_v34  ;;  %v1305_v34 = vrot.slane %v1866_v33, %v2464_v16  ;;  %v1899_v16 = vld [vmem:[%s2522_s6] ss:$0 sm:$0xff] }
 0x32f   :  { %1494 = vmatprep.subr.bf16.mxu1 %v2200_v35  ;;  %v1309_v35 = vrot.slane %v1866_v33, %v2469_v18 }
 0x332   :  { %1495 = vmatpush1.bf16.msra.mxu1 %v2198_v36 }
 0x333   :  { %1496 = vmatprep.subr.bf16.mxu1 %v2203_v37 }
 0x336   :  { %1497 = vmatpush1.bf16.msra.mxu1 %v2201_v38 }
 0x337   :  { %1498 = vmatprep.subr.bf16.mxu1 %v2206_v39 }
 0x33a   :  { %1499 = vmatpush1.bf16.msra.mxu1 %v2204_v40 }
 0x33b   :  { %1500 = vmatprep.subr.bf16.mxu1 %v2209_v58 }
 0x33e   :  { %1501 = vmatpush1.bf16.msra.mxu1 %v2207_v59 }
 0x33f   :  { %1502 = vmatprep.subr.bf16.mxu1 %v2212_v60 }
 0x342   :  { %1503 = vmatpush1.bf16.msra.mxu1 %v2210_v61 }
 0x3d8   :  { %v996_v44 = vpop.f32.mrb[4].mxu1 }
 0x3d9   :  { %v997_v45 = vadd.f32 %v996_v44, %v795_v42  ;;  %v998_v46 = vpop.f32.mrb[5].mxu1 }
 0x3da   :  { %v999_v47 = vadd.f32 %v998_v46, %v799_v43  ;;  %v1000_v48 = vpop.f32.mrb[6].mxu1 }
 0x3db   :  { %v1001_v49 = vadd.f32 %v1000_v48, %v795_v42  ;;  %v1002_v50 = vpop.f32.mrb[7].mxu1  ;;  %v1005_v52 = vmax.f32 %v997_v45, 0.0 }
 0x3dc   :  { %v1003_v51 = vadd.f32 %v1002_v50, %v799_v43  ;;  %v1006_v54 = vmax.f32 %v999_v47, 0.0 }
 0x3dd   :  { %v1007_v53 = vmax.f32 %v1001_v49, 0.0 }
 0x3de   :  { %v1008_v55 = vmax.f32 %v1003_v51, 0.0 }
 0x3df   :  { %v1009_v56 = vpack.c.bf16 %v1007_v53, %v1005_v52 }
 0x3e0   :  { %v1010_v57 = vpack.c.bf16 %v1008_v55, %v1006_v54 }
 0x3e2   :  { %1249 = vmatprep.mubr.bf16.mxu0 %v1010_v57 }
 0x3e3   :  { %1250 = vmatmul.mubr.bf16.vlgmr.msra.gmra.mrb[8].mxu0 %v1009_v56 }
 0x3e4   :  { %1917 = vmatpush3.bf16.msra.mxu0 %v2214_v63 }
 0x3e5   :  { %1918 = vmatprep.subr.bf16.mxu0 %v2215_v0 }
 0x3e8   :  { %1919 = vmatpush3.bf16.msra.mxu0 %v2216_v1 }
 0x3e9   :  { %1920 = vmatprep.subr.bf16.mxu0 %v2217_v2 }
 0x3ec   :  { %1921 = vmatpush3.bf16.msra.mxu0 %v2218_v3 }
 0x3ed   :  { %1922 = vmatprep.subr.bf16.mxu0 %v2219_v4 }
 0x3f0   :  { %1923 = vmatpush3.bf16.msra.mxu0 %v2220_v5 }
 0x3f1   :  { %1924 = vmatprep.subr.bf16.mxu0 %v2221_v6 }
 0x3f4   :  { %1925 = vmatpush3.bf16.msra.mxu0 %v2222_v7 }
 0x3f5   :  { %1926 = vmatprep.subr.bf16.mxu0 %v2223_v8 }
 0x3f8   :  { %1927 = vmatpush3.bf16.msra.mxu0 %v2224_v28 }
 0x3f9   :  { %1928 = vmatprep.subr.bf16.mxu0 %v2225_v29 }
 0x3fc   :  { %1929 = vmatpush3.bf16.msra.mxu0 %v2226_v30 }
 0x3fd   :  { %1930 = vmatprep.subr.bf16.mxu0 %v2227_v31 }
 0x400   :  { %1931 = vmatpush3.bf16.msra.mxu0 %v2228_v32 }
 0x4b6   :  { %v1251_v12 = vpop.f32.mrb[8].mxu0 }
 0x4b7   :  { %v1252_v13 = vadd.f32 %v1251_v12, %v1050_v10  ;;  %v1253_v14 = vpop.f32.mrb[9].mxu0 }
 0x4b8   :  { %v1254_v15 = vadd.f32 %v1253_v14, %v1054_v11  ;;  %v1255_v17 = vpop.f32.mrb[10].mxu0 }
 0x4b9   :  { %v1256_v19 = vadd.f32 %v1255_v17, %v1050_v10  ;;  %v1257_v20 = vpop.f32.mrb[11].mxu0  ;;  %v1260_v22 = vmax.f32 %v1252_v13, 0.0 }
 0x4ba   :  { %v1258_v21 = vadd.f32 %v1257_v20, %v1054_v11  ;;  %v1261_v24 = vmax.f32 %v1254_v15, 0.0 }
 0x4bb   :  { %v1262_v23 = vmax.f32 %v1256_v19, 0.0 }
 0x4bc   :  { %v1263_v25 = vmax.f32 %v1258_v21, 0.0 }
 0x4bd   :  { %v1264_v26 = vpack.c.bf16 %v1262_v23, %v1260_v22 }
 0x4be   :  { %v1265_v27 = vpack.c.bf16 %v1263_v25, %v1261_v24 }
 0x4c0   :  { %1504 = vmatprep.mubr.bf16.mxu1 %v1265_v27 }
 0x4c1   :  { %1505 = vmatmul.mubr.bf16.vlgmr.msra.gmra.mrb[8].mxu1 %v1264_v26 }
 0x594   :  { %v1506_v36 = vpop.f32.mrb[8].mxu1 }
 0x595   :  { %v1507_v37 = vadd.f32 %v1506_v36, %v1305_v34  ;;  %v1508_v38 = vpop.f32.mrb[9].mxu1 }
 0x596   :  { %v1509_v39 = vadd.f32 %v1508_v38, %v1309_v35  ;;  %v1510_v40 = vpop.f32.mrb[10].mxu1 }
 0x597   :  { %v1511_v41 = vadd.f32 %v1510_v40, %v1305_v34  ;;  %v1512_v42 = vpop.f32.mrb[11].mxu1  ;;  %v1515_v44 = vmax.f32 %v1507_v37, 0.0 }
 0x598   :  { %v1513_v43 = vadd.f32 %v1512_v42, %v1309_v35  ;;  %v1516_v46 = vmax.f32 %v1509_v39, 0.0 }
 0x599   :  { %v1517_v45 = vmax.f32 %v1511_v41, 0.0 }
 0x59a   :  { %v1518_v47 = vmax.f32 %v1513_v43, 0.0 }
 0x59b   :  { %v1519_v48 = vpack.c.bf16 %v1517_v45, %v1515_v44 }
 0x59c   :  { %v1520_v49 = vpack.c.bf16 %v1518_v47, %v1516_v46 }
 0x59e   :  { %1688 = vmatprep.mubr.bf16.mxu0 %v1520_v49 }
 0x59f   :  { %1689 = vmatmul.mubr.bf16.vlgmr.msra.gmra.mrb[12].mxu0 %v1519_v48 }
 0x672   :  { %v1932_v50 = vpop.f32.mrb[12].mxu0 }
 0x673   :  { %v1933_v18 = vpop.f32.mrb[13].mxu0 }
 0x674   :  { %v1934_v51 = vadd.f32 %v1933_v18, %v1932_v50  ;;  %v1935_v52 = vpop.f32.mrb[14].mxu0 }
 0x675   :  { %v1936_v53 = vpop.f32.mrb[15].mxu0 }
 0x676   :  { %v1691_v54 = vadd.f32 %v1934_v51, %v1899_v16  ;;  %v1937_v55 = vadd.f32 %v1936_v53, %v1935_v52 }
 0x678   :  { %1697 = vst [vmem:[#allocation10] sm:$0xff] %v1691_v54  ;;  %v1694_v56 = vadd.f32 %v1937_v55, %v1899_v16 }
 0x67a   :  { %1698 = vst [vmem:[#allocation10 + $0x8] sm:$0xff] %v1694_v56 }
 0x67b   :  { %2328 = shalt.err (!%p2325_p8)
}
 0x67c   :  { %s2329_s21 = scalar_lea.hbm %s2523_s7, 256 }
 0x67d   :  { %p2330_p9 = scmp.ne.s32.totalorder %s2523_s7, %s2329_s21  ;;  %p2333_p10 = scmp.lt.u32.totalorder %s2329_s21, %s2523_s7 }
 0x67f   :  { %p2335_p11 = pnand %p2333_p10, %p2330_p9 }
 0x681   :  { %2338 = shalt.err (!%p2335_p11)
}
 0x682   :  { %1710 = dma.vmem_to_hbm [thread:$0]  %s1705_s16, 256, %s2523_s7, [#allocation4], %s2348_s11, %s2348_s11, %s2349_s12  }
 0x683   :  { %2345 = dma.done.wait [#allocation4], 256  }
 0x684   :  { %2346 = vsyncadd [#allocation4], 4294967040 }
 0x685   :  { %1714 = vsyncpa [#allocation3], 1 }
 0x686   :  { %1715 = vsyncpa [#allocation6], 1 }
 0x687   :  { %1716 = vsyncpa [#allocation9], 1 }
 0x688   :  { %1717 = vsyncpa [#allocation4], 1 }

</bundles_post_ra>
